<compile_context>
chip_gen: v7x
topology: tpu7x:2x2x1
jax: 0.10.0
libtpu: 0.0.40
codegen_flags: <defaults>
</compile_context>

<pallas_src>
import jax
import jax.numpy as jnp
from jax.experimental import pallas as pl
from jax.experimental.pallas import tpu as pltpu


def _tanh_conv(w, b, x):
    """tanh(w @ x + b) via VPU broadcast-FMA outer products over channels.

    w: (Cout, Cin)   b: (Cout, 1)   x: (Cin, TP)   ->   (Cout, TP)
    """
    cout, cin = w.shape
    acc = w[:, 0:1] * x[0:1, :] + b               # bias folded into first term
    for ci in range(1, cin):
        acc = acc + w[:, ci:ci + 1] * x[ci:ci + 1, :]
    return jnp.tanh(acc)


def _fused_forward_kernel(x_ref, w1a_ref, b1a_ref, w2a_ref, b2a_ref,
                          w2b_ref, b2b_ref, w1b_ref, b1b_ref, o_ref):
    # x_ref:(3,TP)  weights: pre-folded (see model_forward)  o_ref:(16,TP)
    x = x_ref[...]

    # t1 = conv1(x); t2 = sigmoid(t1)   ->  v1 = tanh(0.5*W1 x + 0.5*b1)
    v = _tanh_conv(w1a_ref[...], b1a_ref[...], x)            # (16, TP)

    # t3 = conv1(t2): dead code with mismatched channels -> skipped.
    # t4 = sigmoid(t2): double sigmoid collapses to one affine + tanh.
    v = jnp.tanh(0.25 * v + 0.25)                             # (16, TP)

    # t5 = conv2(t4); t6 = sigmoid(t5)
    v = _tanh_conv(w2a_ref[...], b2a_ref[...], v)             # (8, TP)

    # t7..t24: nine more conv2 + sigmoid on 8-channel tensors
    # (conv2 expects 16 in-ch; zero-pad missing == first 8 weight columns).
    w2b = w2b_ref[...]
    b2b = b2b_ref[...]
    for _ in range(9):                                        # static unroll
        v = _tanh_conv(w2b, b2b, v)                           # (8, TP)

    # t25 = conv1(t24) (conv1 expects 3 in-ch; truncate to first 3 channels);
    # t26 = sigmoid(t25).  Only remaining sigmoid affine applied here.
    v = _tanh_conv(w1b_ref[...], b1b_ref[...], v[0:3, :])     # (16, TP)
    o_ref[...] = 0.5 * v + 0.5


def _pick_tile_hw(hw, n, max_tile=8192):
    """Lane-dense pixel tile.  Full-extent blocks are always layout-legal;
    partial tiles must be a multiple of 128 (tail grid step is masked).
    Keep >=2 total grid steps so v7x's two TensorCores both get work."""
    if hw <= 128:
        return hw
    if n == 1:
        half = -(-hw // 2)                       # ceil(hw/2)
        return min(max_tile, -(-half // 128) * 128)
    return hw if hw <= max_tile else max_tile


def model_forward(x_nchw, w1, b1, w2, b2, *, max_tile=8192):
    """x_nchw: (N,3,H,W) f32.  w1:(16,3,1,1) b1:(16,)  w2:(8,16,1,1) b2:(8,)."""
    N, C, H, W = x_nchw.shape
    assert C == 3
    HW = H * W
    tile_hw = _pick_tile_hw(HW, N, max_tile)
    grid = (N, pl.cdiv(HW, tile_hw))

    # Free reshape (no HBM transpose): channels-major per image, HW lane-dense.
    x_v = x_nchw.reshape(N, C, HW)

    # ---- host-side folding of the sigmoid affine into the conv params ----
    # sigmoid(z) = 0.5*tanh(0.5*z) + 0.5 ; with activations t = 0.5*v + 0.5
    # each conv+sigmoid becomes v' = tanh(W' v + b'),
    #   W' = 0.25*W,  b' = 0.25*(W·1) + 0.5*b   (first layer: 0.5*W, 0.5*b).
    w1m = w1.reshape(16, 3).astype(jnp.float32)
    w2m = w2.reshape(8, 16).astype(jnp.float32)
    b1c = b1.reshape(16, 1).astype(jnp.float32)
    b2c = b2.reshape(8, 1).astype(jnp.float32)
    w28 = w2m[:, 0:8]

    w1a, b1a = 0.5 * w1m, 0.5 * b1c
    w2a, b2a = 0.25 * w2m, 0.25 * jnp.sum(w2m, axis=1, keepdims=True) + 0.5 * b2c
    w2b, b2b = 0.25 * w28, 0.25 * jnp.sum(w28, axis=1, keepdims=True) + 0.5 * b2c
    w1b, b1b = 0.25 * w1m, 0.25 * jnp.sum(w1m, axis=1, keepdims=True) + 0.5 * b1c

    # ~800 MACs (1600 flops), 128 transcendentals, 76 B of HBM per pixel.
    P = N * HW
    cost = pl.CostEstimate(flops=1600 * P, transcendentals=128 * P,
                           bytes_accessed=76 * P)

    def wspec(shape):
        return pl.BlockSpec(shape, lambda n, i: (0, 0))   # tiny resident weights

    out = pl.pallas_call(
        _fused_forward_kernel,
        out_shape=jax.ShapeDtypeStruct((N, 16, HW), jnp.float32),
        grid_spec=pltpu.PrefetchScalarGridSpec(
            num_scalar_prefetch=0,
            grid=grid,
            in_specs=[
                pl.BlockSpec((None, 3, tile_hw), lambda n, i: (n, 0, i)),
                wspec((16, 3)), wspec((16, 1)),
                wspec((8, 16)), wspec((8, 1)),
                wspec((8, 8)), wspec((8, 1)),
                wspec((16, 3)), wspec((16, 1)),
            ],
            out_specs=pl.BlockSpec((None, 16, tile_hw), lambda n, i: (n, 0, i)),
        ),
        compiler_params=pltpu.CompilerParams(
            dimension_semantics=("parallel", "parallel"),
            vmem_limit_bytes=32 * 1024 * 1024),
        cost_estimate=cost,
    )(x_v, w1a, b1a, w2a, b2a, w2b, b2b, w1b, b1b)

    return out.reshape(N, 16, H, W)


def reference_forward(x_nchw, w1, b1, w2, b2):
    """Pure-JAX reference (sigmoid chain) with the same channel-fixup rules."""
    sig = jax.nn.sigmoid
    N, C, H, W = x_nchw.shape
    x = jnp.transpose(x_nchw, (0, 2, 3, 1)).reshape(-1, C)    # (P, 3)
    w1_t = w1.reshape(16, 3).T
    w2_t = w2.reshape(8, 16).T
    t2 = sig(x @ w1_t + b1)
    t4 = sig(t2)
    t = sig(t4 @ w2_t + b2)
    for _ in range(9):
        t = sig(t @ w2_t[0:8, :] + b2)
    out = sig(t[:, 0:3] @ w1_t + b1)
    return out.reshape(N, H, W, 16).transpose(0, 3, 1, 2)


if __name__ == "__main__":
    key = jax.random.PRNGKey(0)
    k_x, k_w1, k_b1, k_w2, k_b2 = jax.random.split(key, 5)

    # Small shapes consistent with the module (NCHW, 3 input channels).
    N, H, W = 2, 16, 16
    x = jax.random.normal(k_x, (N, 3, H, W), dtype=jnp.float32)

    # Deterministic params (shapes from Conv2d(3,16,1) / Conv2d(16,8,1)).
    w1 = 0.3 * jax.random.normal(k_w1, (16, 3, 1, 1), dtype=jnp.float32)
    b1 = 0.1 * jax.random.normal(k_b1, (16,), dtype=jnp.float32)
    w2 = 0.3 * jax.random.normal(k_w2, (8, 16, 1, 1), dtype=jnp.float32)
    b2 = 0.1 * jax.random.normal(k_b2, (8,), dtype=jnp.float32)

    out = jax.block_until_ready(model_forward(x, w1, b1, w2, b2))
    ref = jax.block_until_ready(reference_forward(x, w1, b1, w2, b2))

    assert out.shape == (N, 16, H, W), out.shape
    assert jnp.allclose(out, ref, rtol=1e-4, atol=1e-4), "mismatch vs reference"
    print("KERNEL_OK")
</pallas_src>

<mosaic_0001>
module attributes {stable_mosaic.version = 11 : i64} {
  func.func @_fused_forward_kernel(%arg0: i32, %arg1: i32, %arg2: memref<1x3x256xf32, #tpu.memory_space<vmem>>, %arg3: memref<16x3xf32, #tpu.memory_space<vmem>>, %arg4: memref<16x1xf32, #tpu.memory_space<vmem>>, %arg5: memref<8x16xf32, #tpu.memory_space<vmem>>, %arg6: memref<8x1xf32, #tpu.memory_space<vmem>>, %arg7: memref<8x8xf32, #tpu.memory_space<vmem>>, %arg8: memref<8x1xf32, #tpu.memory_space<vmem>>, %arg9: memref<16x3xf32, #tpu.memory_space<vmem>>, %arg10: memref<16x1xf32, #tpu.memory_space<vmem>>, %arg11: memref<1x16x256xf32, #tpu.memory_space<vmem>>) attributes {dimension_semantics = [#tpu.dimension_semantics<parallel>, #tpu.dimension_semantics<parallel>], iteration_bounds = array<i64: 2, 1>, scalar_prefetch = 0 : i64, scratch_operands = 0 : i64, tpu.core_type = #tpu.core_type<tc>, window_params = [{transform_indices = @transform_0, window_bounds = array<i64: 1, 3, 256>}, {pipeline_mode = #tpu.pipeline_mode<synchronous>, transform_indices = @transform_1, window_bounds = array<i64: 16, 3>}, {pipeline_mode = #tpu.pipeline_mode<synchronous>, transform_indices = @transform_2, window_bounds = array<i64: 16, 1>}, {pipeline_mode = #tpu.pipeline_mode<synchronous>, transform_indices = @transform_3, window_bounds = array<i64: 8, 16>}, {pipeline_mode = #tpu.pipeline_mode<synchronous>, transform_indices = @transform_4, window_bounds = array<i64: 8, 1>}, {pipeline_mode = #tpu.pipeline_mode<synchronous>, transform_indices = @transform_5, window_bounds = array<i64: 8, 8>}, {pipeline_mode = #tpu.pipeline_mode<synchronous>, transform_indices = @transform_6, window_bounds = array<i64: 8, 1>}, {pipeline_mode = #tpu.pipeline_mode<synchronous>, transform_indices = @transform_7, window_bounds = array<i64: 16, 3>}, {pipeline_mode = #tpu.pipeline_mode<synchronous>, transform_indices = @transform_8, window_bounds = array<i64: 16, 1>}, {transform_indices = @transform_9, window_bounds = array<i64: 1, 16, 256>}]} {
    %c0 = arith.constant 0 : index
    %c0_0 = arith.constant 0 : index
    %c0_1 = arith.constant 0 : index
    %0 = vector.load %arg2[%c0, %c0_0, %c0_1] : memref<1x3x256xf32, #tpu.memory_space<vmem>>, vector<1x3x256xf32>
    %1 = vector.shape_cast %0 : vector<1x3x256xf32> to vector<3x256xf32>
    %c0_2 = arith.constant 0 : index
    %c0_3 = arith.constant 0 : index
    %2 = vector.load %arg3[%c0_2, %c0_3] : memref<16x3xf32, #tpu.memory_space<vmem>>, vector<16x3xf32>
    %c0_4 = arith.constant 0 : index
    %c0_5 = arith.constant 0 : index
    %3 = vector.load %arg4[%c0_4, %c0_5] : memref<16x1xf32, #tpu.memory_space<vmem>>, vector<16x1xf32>
    %4 = vector.extract_strided_slice %2 {offsets = [0, 0], sizes = [16, 1], strides = [1, 1]} : vector<16x3xf32> to vector<16x1xf32>
    %5 = vector.extract_strided_slice %1 {offsets = [0, 0], sizes = [1, 256], strides = [1, 1]} : vector<3x256xf32> to vector<1x256xf32>
    %6 = vector.broadcast %4 : vector<16x1xf32> to vector<16x256xf32>
    %7 = vector.broadcast %5 : vector<1x256xf32> to vector<16x256xf32>
    %8 = arith.mulf %6, %7 : vector<16x256xf32>
    %9 = vector.broadcast %3 : vector<16x1xf32> to vector<16x256xf32>
    %10 = arith.addf %8, %9 : vector<16x256xf32>
    %11 = vector.extract_strided_slice %2 {offsets = [0, 1], sizes = [16, 1], strides = [1, 1]} : vector<16x3xf32> to vector<16x1xf32>
    %12 = vector.extract_strided_slice %1 {offsets = [1, 0], sizes = [1, 256], strides = [1, 1]} : vector<3x256xf32> to vector<1x256xf32>
    %13 = vector.broadcast %11 : vector<16x1xf32> to vector<16x256xf32>
    %14 = vector.broadcast %12 : vector<1x256xf32> to vector<16x256xf32>
    %15 = arith.mulf %13, %14 : vector<16x256xf32>
    %16 = arith.addf %10, %15 : vector<16x256xf32>
    %17 = vector.extract_strided_slice %2 {offsets = [0, 2], sizes = [16, 1], strides = [1, 1]} : vector<16x3xf32> to vector<16x1xf32>
    %18 = vector.extract_strided_slice %1 {offsets = [2, 0], sizes = [1, 256], strides = [1, 1]} : vector<3x256xf32> to vector<1x256xf32>
    %19 = vector.broadcast %17 : vector<16x1xf32> to vector<16x256xf32>
    %20 = vector.broadcast %18 : vector<1x256xf32> to vector<16x256xf32>
    %21 = arith.mulf %19, %20 : vector<16x256xf32>
    %22 = arith.addf %16, %21 : vector<16x256xf32>
    %23 = math.tanh %22 : vector<16x256xf32>
    %cst = arith.constant 2.500000e-01 : f32
    %24 = vector.broadcast %cst : f32 to vector<16x256xf32>
    %25 = arith.mulf %24, %23 : vector<16x256xf32>
    %cst_6 = arith.constant 2.500000e-01 : f32
    %26 = vector.broadcast %cst_6 : f32 to vector<16x256xf32>
    %27 = arith.addf %25, %26 : vector<16x256xf32>
    %28 = math.tanh %27 : vector<16x256xf32>
    %c0_7 = arith.constant 0 : index
    %c0_8 = arith.constant 0 : index
    %29 = vector.load %arg5[%c0_7, %c0_8] : memref<8x16xf32, #tpu.memory_space<vmem>>, vector<8x16xf32>
    %c0_9 = arith.constant 0 : index
    %c0_10 = arith.constant 0 : index
    %30 = vector.load %arg6[%c0_9, %c0_10] : memref<8x1xf32, #tpu.memory_space<vmem>>, vector<8x1xf32>
    %31 = vector.extract_strided_slice %29 {offsets = [0, 0], sizes = [8, 1], strides = [1, 1]} : vector<8x16xf32> to vector<8x1xf32>
    %32 = vector.extract_strided_slice %28 {offsets = [0, 0], sizes = [1, 256], strides = [1, 1]} : vector<16x256xf32> to vector<1x256xf32>
    %33 = vector.broadcast %31 : vector<8x1xf32> to vector<8x256xf32>
    %34 = vector.broadcast %32 : vector<1x256xf32> to vector<8x256xf32>
    %35 = arith.mulf %33, %34 : vector<8x256xf32>
    %36 = vector.broadcast %30 : vector<8x1xf32> to vector<8x256xf32>
    %37 = arith.addf %35, %36 : vector<8x256xf32>
    %38 = vector.extract_strided_slice %29 {offsets = [0, 1], sizes = [8, 1], strides = [1, 1]} : vector<8x16xf32> to vector<8x1xf32>
    %39 = vector.extract_strided_slice %28 {offsets = [1, 0], sizes = [1, 256], strides = [1, 1]} : vector<16x256xf32> to vector<1x256xf32>
    %40 = vector.broadcast %38 : vector<8x1xf32> to vector<8x256xf32>
    %41 = vector.broadcast %39 : vector<1x256xf32> to vector<8x256xf32>
    %42 = arith.mulf %40, %41 : vector<8x256xf32>
    %43 = arith.addf %37, %42 : vector<8x256xf32>
    %44 = vector.extract_strided_slice %29 {offsets = [0, 2], sizes = [8, 1], strides = [1, 1]} : vector<8x16xf32> to vector<8x1xf32>
    %45 = vector.extract_strided_slice %28 {offsets = [2, 0], sizes = [1, 256], strides = [1, 1]} : vector<16x256xf32> to vector<1x256xf32>
    %46 = vector.broadcast %44 : vector<8x1xf32> to vector<8x256xf32>
    %47 = vector.broadcast %45 : vector<1x256xf32> to vector<8x256xf32>
    %48 = arith.mulf %46, %47 : vector<8x256xf32>
    %49 = arith.addf %43, %48 : vector<8x256xf32>
    %50 = vector.extract_strided_slice %29 {offsets = [0, 3], sizes = [8, 1], strides = [1, 1]} : vector<8x16xf32> to vector<8x1xf32>
    %51 = vector.extract_strided_slice %28 {offsets = [3, 0], sizes = [1, 256], strides = [1, 1]} : vector<16x256xf32> to vector<1x256xf32>
    %52 = vector.broadcast %50 : vector<8x1xf32> to vector<8x256xf32>
    %53 = vector.broadcast %51 : vector<1x256xf32> to vector<8x256xf32>
    %54 = arith.mulf %52, %53 : vector<8x256xf32>
    %55 = arith.addf %49, %54 : vector<8x256xf32>
    %56 = vector.extract_strided_slice %29 {offsets = [0, 4], sizes = [8, 1], strides = [1, 1]} : vector<8x16xf32> to vector<8x1xf32>
    %57 = vector.extract_strided_slice %28 {offsets = [4, 0], sizes = [1, 256], strides = [1, 1]} : vector<16x256xf32> to vector<1x256xf32>
    %58 = vector.broadcast %56 : vector<8x1xf32> to vector<8x256xf32>
    %59 = vector.broadcast %57 : vector<1x256xf32> to vector<8x256xf32>
    %60 = arith.mulf %58, %59 : vector<8x256xf32>
    %61 = arith.addf %55, %60 : vector<8x256xf32>
    %62 = vector.extract_strided_slice %29 {offsets = [0, 5], sizes = [8, 1], strides = [1, 1]} : vector<8x16xf32> to vector<8x1xf32>
    %63 = vector.extract_strided_slice %28 {offsets = [5, 0], sizes = [1, 256], strides = [1, 1]} : vector<16x256xf32> to vector<1x256xf32>
    %64 = vector.broadcast %62 : vector<8x1xf32> to vector<8x256xf32>
    %65 = vector.broadcast %63 : vector<1x256xf32> to vector<8x256xf32>
    %66 = arith.mulf %64, %65 : vector<8x256xf32>
    %67 = arith.addf %61, %66 : vector<8x256xf32>
    %68 = vector.extract_strided_slice %29 {offsets = [0, 6], sizes = [8, 1], strides = [1, 1]} : vector<8x16xf32> to vector<8x1xf32>
    %69 = vector.extract_strided_slice %28 {offsets = [6, 0], sizes = [1, 256], strides = [1, 1]} : vector<16x256xf32> to vector<1x256xf32>
    %70 = vector.broadcast %68 : vector<8x1xf32> to vector<8x256xf32>
    %71 = vector.broadcast %69 : vector<1x256xf32> to vector<8x256xf32>
    %72 = arith.mulf %70, %71 : vector<8x256xf32>
    %73 = arith.addf %67, %72 : vector<8x256xf32>
    %74 = vector.extract_strided_slice %29 {offsets = [0, 7], sizes = [8, 1], strides = [1, 1]} : vector<8x16xf32> to vector<8x1xf32>
    %75 = vector.extract_strided_slice %28 {offsets = [7, 0], sizes = [1, 256], strides = [1, 1]} : vector<16x256xf32> to vector<1x256xf32>
    %76 = vector.broadcast %74 : vector<8x1xf32> to vector<8x256xf32>
    %77 = vector.broadcast %75 : vector<1x256xf32> to vector<8x256xf32>
    %78 = arith.mulf %76, %77 : vector<8x256xf32>
    %79 = arith.addf %73, %78 : vector<8x256xf32>
    %80 = vector.extract_strided_slice %29 {offsets = [0, 8], sizes = [8, 1], strides = [1, 1]} : vector<8x16xf32> to vector<8x1xf32>
    %81 = vector.extract_strided_slice %28 {offsets = [8, 0], sizes = [1, 256], strides = [1, 1]} : vector<16x256xf32> to vector<1x256xf32>
    %82 = vector.broadcast %80 : vector<8x1xf32> to vector<8x256xf32>
    %83 = vector.broadcast %81 : vector<1x256xf32> to vector<8x256xf32>
    %84 = arith.mulf %82, %83 : vector<8x256xf32>
    %85 = arith.addf %79, %84 : vector<8x256xf32>
    %86 = vector.extract_strided_slice %29 {offsets = [0, 9], sizes = [8, 1], strides = [1, 1]} : vector<8x16xf32> to vector<8x1xf32>
    %87 = vector.extract_strided_slice %28 {offsets = [9, 0], sizes = [1, 256], strides = [1, 1]} : vector<16x256xf32> to vector<1x256xf32>
    %88 = vector.broadcast %86 : vector<8x1xf32> to vector<8x256xf32>
    %89 = vector.broadcast %87 : vector<1x256xf32> to vector<8x256xf32>
    %90 = arith.mulf %88, %89 : vector<8x256xf32>
    %91 = arith.addf %85, %90 : vector<8x256xf32>
    %92 = vector.extract_strided_slice %29 {offsets = [0, 10], sizes = [8, 1], strides = [1, 1]} : vector<8x16xf32> to vector<8x1xf32>
    %93 = vector.extract_strided_slice %28 {offsets = [10, 0], sizes = [1, 256], strides = [1, 1]} : vector<16x256xf32> to vector<1x256xf32>
    %94 = vector.broadcast %92 : vector<8x1xf32> to vector<8x256xf32>
    %95 = vector.broadcast %93 : vector<1x256xf32> to vector<8x256xf32>
    %96 = arith.mulf %94, %95 : vector<8x256xf32>
    %97 = arith.addf %91, %96 : vector<8x256xf32>
    %98 = vector.extract_strided_slice %29 {offsets = [0, 11], sizes = [8, 1], strides = [1, 1]} : vector<8x16xf32> to vector<8x1xf32>
    %99 = vector.extract_strided_slice %28 {offsets = [11, 0], sizes = [1, 256], strides = [1, 1]} : vector<16x256xf32> to vector<1x256xf32>
    %100 = vector.broadcast %98 : vector<8x1xf32> to vector<8x256xf32>
    %101 = vector.broadcast %99 : vector<1x256xf32> to vector<8x256xf32>
    %102 = arith.mulf %100, %101 : vector<8x256xf32>
    %103 = arith.addf %97, %102 : vector<8x256xf32>
    %104 = vector.extract_strided_slice %29 {offsets = [0, 12], sizes = [8, 1], strides = [1, 1]} : vector<8x16xf32> to vector<8x1xf32>
    %105 = vector.extract_strided_slice %28 {offsets = [12, 0], sizes = [1, 256], strides = [1, 1]} : vector<16x256xf32> to vector<1x256xf32>
    %106 = vector.broadcast %104 : vector<8x1xf32> to vector<8x256xf32>
    %107 = vector.broadcast %105 : vector<1x256xf32> to vector<8x256xf32>
    %108 = arith.mulf %106, %107 : vector<8x256xf32>
    %109 = arith.addf %103, %108 : vector<8x256xf32>
    %110 = vector.extract_strided_slice %29 {offsets = [0, 13], sizes = [8, 1], strides = [1, 1]} : vector<8x16xf32> to vector<8x1xf32>
    %111 = vector.extract_strided_slice %28 {offsets = [13, 0], sizes = [1, 256], strides = [1, 1]} : vector<16x256xf32> to vector<1x256xf32>
    %112 = vector.broadcast %110 : vector<8x1xf32> to vector<8x256xf32>
    %113 = vector.broadcast %111 : vector<1x256xf32> to vector<8x256xf32>
    %114 = arith.mulf %112, %113 : vector<8x256xf32>
    %115 = arith.addf %109, %114 : vector<8x256xf32>
    %116 = vector.extract_strided_slice %29 {offsets = [0, 14], sizes = [8, 1], strides = [1, 1]} : vector<8x16xf32> to vector<8x1xf32>
    %117 = vector.extract_strided_slice %28 {offsets = [14, 0], sizes = [1, 256], strides = [1, 1]} : vector<16x256xf32> to vector<1x256xf32>
    %118 = vector.broadcast %116 : vector<8x1xf32> to vector<8x256xf32>
    %119 = vector.broadcast %117 : vector<1x256xf32> to vector<8x256xf32>
    %120 = arith.mulf %118, %119 : vector<8x256xf32>
    %121 = arith.addf %115, %120 : vector<8x256xf32>
    %122 = vector.extract_strided_slice %29 {offsets = [0, 15], sizes = [8, 1], strides = [1, 1]} : vector<8x16xf32> to vector<8x1xf32>
    %123 = vector.extract_strided_slice %28 {offsets = [15, 0], sizes = [1, 256], strides = [1, 1]} : vector<16x256xf32> to vector<1x256xf32>
    %124 = vector.broadcast %122 : vector<8x1xf32> to vector<8x256xf32>
    %125 = vector.broadcast %123 : vector<1x256xf32> to vector<8x256xf32>
    %126 = arith.mulf %124, %125 : vector<8x256xf32>
    %127 = arith.addf %121, %126 : vector<8x256xf32>
    %128 = math.tanh %127 : vector<8x256xf32>
    %c0_11 = arith.constant 0 : index
    %c0_12 = arith.constant 0 : index
    %129 = vector.load %arg7[%c0_11, %c0_12] : memref<8x8xf32, #tpu.memory_space<vmem>>, vector<8x8xf32>
    %c0_13 = arith.constant 0 : index
    %c0_14 = arith.constant 0 : index
    %130 = vector.load %arg8[%c0_13, %c0_14] : memref<8x1xf32, #tpu.memory_space<vmem>>, vector<8x1xf32>
    %131 = vector.extract_strided_slice %129 {offsets = [0, 0], sizes = [8, 1], strides = [1, 1]} : vector<8x8xf32> to vector<8x1xf32>
    %132 = vector.extract_strided_slice %128 {offsets = [0, 0], sizes = [1, 256], strides = [1, 1]} : vector<8x256xf32> to vector<1x256xf32>
    %133 = vector.broadcast %131 : vector<8x1xf32> to vector<8x256xf32>
    %134 = vector.broadcast %132 : vector<1x256xf32> to vector<8x256xf32>
    %135 = arith.mulf %133, %134 : vector<8x256xf32>
    %136 = vector.broadcast %130 : vector<8x1xf32> to vector<8x256xf32>
    %137 = arith.addf %135, %136 : vector<8x256xf32>
    %138 = vector.extract_strided_slice %129 {offsets = [0, 1], sizes = [8, 1], strides = [1, 1]} : vector<8x8xf32> to vector<8x1xf32>
    %139 = vector.extract_strided_slice %128 {offsets = [1, 0], sizes = [1, 256], strides = [1, 1]} : vector<8x256xf32> to vector<1x256xf32>
    %140 = vector.broadcast %138 : vector<8x1xf32> to vector<8x256xf32>
    %141 = vector.broadcast %139 : vector<1x256xf32> to vector<8x256xf32>
    %142 = arith.mulf %140, %141 : vector<8x256xf32>
    %143 = arith.addf %137, %142 : vector<8x256xf32>
    %144 = vector.extract_strided_slice %129 {offsets = [0, 2], sizes = [8, 1], strides = [1, 1]} : vector<8x8xf32> to vector<8x1xf32>
    %145 = vector.extract_strided_slice %128 {offsets = [2, 0], sizes = [1, 256], strides = [1, 1]} : vector<8x256xf32> to vector<1x256xf32>
    %146 = vector.broadcast %144 : vector<8x1xf32> to vector<8x256xf32>
    %147 = vector.broadcast %145 : vector<1x256xf32> to vector<8x256xf32>
    %148 = arith.mulf %146, %147 : vector<8x256xf32>
    %149 = arith.addf %143, %148 : vector<8x256xf32>
    %150 = vector.extract_strided_slice %129 {offsets = [0, 3], sizes = [8, 1], strides = [1, 1]} : vector<8x8xf32> to vector<8x1xf32>
    %151 = vector.extract_strided_slice %128 {offsets = [3, 0], sizes = [1, 256], strides = [1, 1]} : vector<8x256xf32> to vector<1x256xf32>
    %152 = vector.broadcast %150 : vector<8x1xf32> to vector<8x256xf32>
    %153 = vector.broadcast %151 : vector<1x256xf32> to vector<8x256xf32>
    %154 = arith.mulf %152, %153 : vector<8x256xf32>
    %155 = arith.addf %149, %154 : vector<8x256xf32>
    %156 = vector.extract_strided_slice %129 {offsets = [0, 4], sizes = [8, 1], strides = [1, 1]} : vector<8x8xf32> to vector<8x1xf32>
    %157 = vector.extract_strided_slice %128 {offsets = [4, 0], sizes = [1, 256], strides = [1, 1]} : vector<8x256xf32> to vector<1x256xf32>
    %158 = vector.broadcast %156 : vector<8x1xf32> to vector<8x256xf32>
    %159 = vector.broadcast %157 : vector<1x256xf32> to vector<8x256xf32>
    %160 = arith.mulf %158, %159 : vector<8x256xf32>
    %161 = arith.addf %155, %160 : vector<8x256xf32>
    %162 = vector.extract_strided_slice %129 {offsets = [0, 5], sizes = [8, 1], strides = [1, 1]} : vector<8x8xf32> to vector<8x1xf32>
    %163 = vector.extract_strided_slice %128 {offsets = [5, 0], sizes = [1, 256], strides = [1, 1]} : vector<8x256xf32> to vector<1x256xf32>
    %164 = vector.broadcast %162 : vector<8x1xf32> to vector<8x256xf32>
    %165 = vector.broadcast %163 : vector<1x256xf32> to vector<8x256xf32>
    %166 = arith.mulf %164, %165 : vector<8x256xf32>
    %167 = arith.addf %161, %166 : vector<8x256xf32>
    %168 = vector.extract_strided_slice %129 {offsets = [0, 6], sizes = [8, 1], strides = [1, 1]} : vector<8x8xf32> to vector<8x1xf32>
    %169 = vector.extract_strided_slice %128 {offsets = [6, 0], sizes = [1, 256], strides = [1, 1]} : vector<8x256xf32> to vector<1x256xf32>
    %170 = vector.broadcast %168 : vector<8x1xf32> to vector<8x256xf32>
    %171 = vector.broadcast %169 : vector<1x256xf32> to vector<8x256xf32>
    %172 = arith.mulf %170, %171 : vector<8x256xf32>
    %173 = arith.addf %167, %172 : vector<8x256xf32>
    %174 = vector.extract_strided_slice %129 {offsets = [0, 7], sizes = [8, 1], strides = [1, 1]} : vector<8x8xf32> to vector<8x1xf32>
    %175 = vector.extract_strided_slice %128 {offsets = [7, 0], sizes = [1, 256], strides = [1, 1]} : vector<8x256xf32> to vector<1x256xf32>
    %176 = vector.broadcast %174 : vector<8x1xf32> to vector<8x256xf32>
    %177 = vector.broadcast %175 : vector<1x256xf32> to vector<8x256xf32>
    %178 = arith.mulf %176, %177 : vector<8x256xf32>
    %179 = arith.addf %173, %178 : vector<8x256xf32>
    %180 = math.tanh %179 : vector<8x256xf32>
    %181 = vector.extract_strided_slice %129 {offsets = [0, 0], sizes = [8, 1], strides = [1, 1]} : vector<8x8xf32> to vector<8x1xf32>
    %182 = vector.extract_strided_slice %180 {offsets = [0, 0], sizes = [1, 256], strides = [1, 1]} : vector<8x256xf32> to vector<1x256xf32>
    %183 = vector.broadcast %181 : vector<8x1xf32> to vector<8x256xf32>
    %184 = vector.broadcast %182 : vector<1x256xf32> to vector<8x256xf32>
    %185 = arith.mulf %183, %184 : vector<8x256xf32>
    %186 = vector.broadcast %130 : vector<8x1xf32> to vector<8x256xf32>
    %187 = arith.addf %185, %186 : vector<8x256xf32>
    %188 = vector.extract_strided_slice %129 {offsets = [0, 1], sizes = [8, 1], strides = [1, 1]} : vector<8x8xf32> to vector<8x1xf32>
    %189 = vector.extract_strided_slice %180 {offsets = [1, 0], sizes = [1, 256], strides = [1, 1]} : vector<8x256xf32> to vector<1x256xf32>
    %190 = vector.broadcast %188 : vector<8x1xf32> to vector<8x256xf32>
    %191 = vector.broadcast %189 : vector<1x256xf32> to vector<8x256xf32>
    %192 = arith.mulf %190, %191 : vector<8x256xf32>
    %193 = arith.addf %187, %192 : vector<8x256xf32>
    %194 = vector.extract_strided_slice %129 {offsets = [0, 2], sizes = [8, 1], strides = [1, 1]} : vector<8x8xf32> to vector<8x1xf32>
    %195 = vector.extract_strided_slice %180 {offsets = [2, 0], sizes = [1, 256], strides = [1, 1]} : vector<8x256xf32> to vector<1x256xf32>
    %196 = vector.broadcast %194 : vector<8x1xf32> to vector<8x256xf32>
    %197 = vector.broadcast %195 : vector<1x256xf32> to vector<8x256xf32>
    %198 = arith.mulf %196, %197 : vector<8x256xf32>
    %199 = arith.addf %193, %198 : vector<8x256xf32>
    %200 = vector.extract_strided_slice %129 {offsets = [0, 3], sizes = [8, 1], strides = [1, 1]} : vector<8x8xf32> to vector<8x1xf32>
    %201 = vector.extract_strided_slice %180 {offsets = [3, 0], sizes = [1, 256], strides = [1, 1]} : vector<8x256xf32> to vector<1x256xf32>
    %202 = vector.broadcast %200 : vector<8x1xf32> to vector<8x256xf32>
    %203 = vector.broadcast %201 : vector<1x256xf32> to vector<8x256xf32>
    %204 = arith.mulf %202, %203 : vector<8x256xf32>
    %205 = arith.addf %199, %204 : vector<8x256xf32>
    %206 = vector.extract_strided_slice %129 {offsets = [0, 4], sizes = [8, 1], strides = [1, 1]} : vector<8x8xf32> to vector<8x1xf32>
    %207 = vector.extract_strided_slice %180 {offsets = [4, 0], sizes = [1, 256], strides = [1, 1]} : vector<8x256xf32> to vector<1x256xf32>
    %208 = vector.broadcast %206 : vector<8x1xf32> to vector<8x256xf32>
    %209 = vector.broadcast %207 : vector<1x256xf32> to vector<8x256xf32>
    %210 = arith.mulf %208, %209 : vector<8x256xf32>
    %211 = arith.addf %205, %210 : vector<8x256xf32>
    %212 = vector.extract_strided_slice %129 {offsets = [0, 5], sizes = [8, 1], strides = [1, 1]} : vector<8x8xf32> to vector<8x1xf32>
    %213 = vector.extract_strided_slice %180 {offsets = [5, 0], sizes = [1, 256], strides = [1, 1]} : vector<8x256xf32> to vector<1x256xf32>
    %214 = vector.broadcast %212 : vector<8x1xf32> to vector<8x256xf32>
    %215 = vector.broadcast %213 : vector<1x256xf32> to vector<8x256xf32>
    %216 = arith.mulf %214, %215 : vector<8x256xf32>
    %217 = arith.addf %211, %216 : vector<8x256xf32>
    %218 = vector.extract_strided_slice %129 {offsets = [0, 6], sizes = [8, 1], strides = [1, 1]} : vector<8x8xf32> to vector<8x1xf32>
    %219 = vector.extract_strided_slice %180 {offsets = [6, 0], sizes = [1, 256], strides = [1, 1]} : vector<8x256xf32> to vector<1x256xf32>
    %220 = vector.broadcast %218 : vector<8x1xf32> to vector<8x256xf32>
    %221 = vector.broadcast %219 : vector<1x256xf32> to vector<8x256xf32>
    %222 = arith.mulf %220, %221 : vector<8x256xf32>
    %223 = arith.addf %217, %222 : vector<8x256xf32>
    %224 = vector.extract_strided_slice %129 {offsets = [0, 7], sizes = [8, 1], strides = [1, 1]} : vector<8x8xf32> to vector<8x1xf32>
    %225 = vector.extract_strided_slice %180 {offsets = [7, 0], sizes = [1, 256], strides = [1, 1]} : vector<8x256xf32> to vector<1x256xf32>
    %226 = vector.broadcast %224 : vector<8x1xf32> to vector<8x256xf32>
    %227 = vector.broadcast %225 : vector<1x256xf32> to vector<8x256xf32>
    %228 = arith.mulf %226, %227 : vector<8x256xf32>
    %229 = arith.addf %223, %228 : vector<8x256xf32>
    %230 = math.tanh %229 : vector<8x256xf32>
    %231 = vector.extract_strided_slice %129 {offsets = [0, 0], sizes = [8, 1], strides = [1, 1]} : vector<8x8xf32> to vector<8x1xf32>
    %232 = vector.extract_strided_slice %230 {offsets = [0, 0], sizes = [1, 256], strides = [1, 1]} : vector<8x256xf32> to vector<1x256xf32>
    %233 = vector.broadcast %231 : vector<8x1xf32> to vector<8x256xf32>
    %234 = vector.broadcast %232 : vector<1x256xf32> to vector<8x256xf32>
    %235 = arith.mulf %233, %234 : vector<8x256xf32>
    %236 = vector.broadcast %130 : vector<8x1xf32> to vector<8x256xf32>
    %237 = arith.addf %235, %236 : vector<8x256xf32>
    %238 = vector.extract_strided_slice %129 {offsets = [0, 1], sizes = [8, 1], strides = [1, 1]} : vector<8x8xf32> to vector<8x1xf32>
    %239 = vector.extract_strided_slice %230 {offsets = [1, 0], sizes = [1, 256], strides = [1, 1]} : vector<8x256xf32> to vector<1x256xf32>
    %240 = vector.broadcast %238 : vector<8x1xf32> to vector<8x256xf32>
    %241 = vector.broadcast %239 : vector<1x256xf32> to vector<8x256xf32>
    %242 = arith.mulf %240, %241 : vector<8x256xf32>
    %243 = arith.addf %237, %242 : vector<8x256xf32>
    %244 = vector.extract_strided_slice %129 {offsets = [0, 2], sizes = [8, 1], strides = [1, 1]} : vector<8x8xf32> to vector<8x1xf32>
    %245 = vector.extract_strided_slice %230 {offsets = [2, 0], sizes = [1, 256], strides = [1, 1]} : vector<8x256xf32> to vector<1x256xf32>
    %246 = vector.broadcast %244 : vector<8x1xf32> to vector<8x256xf32>
    %247 = vector.broadcast %245 : vector<1x256xf32> to vector<8x256xf32>
    %248 = arith.mulf %246, %247 : vector<8x256xf32>
    %249 = arith.addf %243, %248 : vector<8x256xf32>
    %250 = vector.extract_strided_slice %129 {offsets = [0, 3], sizes = [8, 1], strides = [1, 1]} : vector<8x8xf32> to vector<8x1xf32>
    %251 = vector.extract_strided_slice %230 {offsets = [3, 0], sizes = [1, 256], strides = [1, 1]} : vector<8x256xf32> to vector<1x256xf32>
    %252 = vector.broadcast %250 : vector<8x1xf32> to vector<8x256xf32>
    %253 = vector.broadcast %251 : vector<1x256xf32> to vector<8x256xf32>
    %254 = arith.mulf %252, %253 : vector<8x256xf32>
    %255 = arith.addf %249, %254 : vector<8x256xf32>
    %256 = vector.extract_strided_slice %129 {offsets = [0, 4], sizes = [8, 1], strides = [1, 1]} : vector<8x8xf32> to vector<8x1xf32>
    %257 = vector.extract_strided_slice %230 {offsets = [4, 0], sizes = [1, 256], strides = [1, 1]} : vector<8x256xf32> to vector<1x256xf32>
    %258 = vector.broadcast %256 : vector<8x1xf32> to vector<8x256xf32>
    %259 = vector.broadcast %257 : vector<1x256xf32> to vector<8x256xf32>
    %260 = arith.mulf %258, %259 : vector<8x256xf32>
    %261 = arith.addf %255, %260 : vector<8x256xf32>
    %262 = vector.extract_strided_slice %129 {offsets = [0, 5], sizes = [8, 1], strides = [1, 1]} : vector<8x8xf32> to vector<8x1xf32>
    %263 = vector.extract_strided_slice %230 {offsets = [5, 0], sizes = [1, 256], strides = [1, 1]} : vector<8x256xf32> to vector<1x256xf32>
    %264 = vector.broadcast %262 : vector<8x1xf32> to vector<8x256xf32>
    %265 = vector.broadcast %263 : vector<1x256xf32> to vector<8x256xf32>
    %266 = arith.mulf %264, %265 : vector<8x256xf32>
    %267 = arith.addf %261, %266 : vector<8x256xf32>
    %268 = vector.extract_strided_slice %129 {offsets = [0, 6], sizes = [8, 1], strides = [1, 1]} : vector<8x8xf32> to vector<8x1xf32>
    %269 = vector.extract_strided_slice %230 {offsets = [6, 0], sizes = [1, 256], strides = [1, 1]} : vector<8x256xf32> to vector<1x256xf32>
    %270 = vector.broadcast %268 : vector<8x1xf32> to vector<8x256xf32>
    %271 = vector.broadcast %269 : vector<1x256xf32> to vector<8x256xf32>
    %272 = arith.mulf %270, %271 : vector<8x256xf32>
    %273 = arith.addf %267, %272 : vector<8x256xf32>
    %274 = vector.extract_strided_slice %129 {offsets = [0, 7], sizes = [8, 1], strides = [1, 1]} : vector<8x8xf32> to vector<8x1xf32>
    %275 = vector.extract_strided_slice %230 {offsets = [7, 0], sizes = [1, 256], strides = [1, 1]} : vector<8x256xf32> to vector<1x256xf32>
    %276 = vector.broadcast %274 : vector<8x1xf32> to vector<8x256xf32>
    %277 = vector.broadcast %275 : vector<1x256xf32> to vector<8x256xf32>
    %278 = arith.mulf %276, %277 : vector<8x256xf32>
    %279 = arith.addf %273, %278 : vector<8x256xf32>
    %280 = math.tanh %279 : vector<8x256xf32>
    %281 = vector.extract_strided_slice %129 {offsets = [0, 0], sizes = [8, 1], strides = [1, 1]} : vector<8x8xf32> to vector<8x1xf32>
    %282 = vector.extract_strided_slice %280 {offsets = [0, 0], sizes = [1, 256], strides = [1, 1]} : vector<8x256xf32> to vector<1x256xf32>
    %283 = vector.broadcast %281 : vector<8x1xf32> to vector<8x256xf32>
    %284 = vector.broadcast %282 : vector<1x256xf32> to vector<8x256xf32>
    %285 = arith.mulf %283, %284 : vector<8x256xf32>
    %286 = vector.broadcast %130 : vector<8x1xf32> to vector<8x256xf32>
    %287 = arith.addf %285, %286 : vector<8x256xf32>
    %288 = vector.extract_strided_slice %129 {offsets = [0, 1], sizes = [8, 1], strides = [1, 1]} : vector<8x8xf32> to vector<8x1xf32>
    %289 = vector.extract_strided_slice %280 {offsets = [1, 0], sizes = [1, 256], strides = [1, 1]} : vector<8x256xf32> to vector<1x256xf32>
    %290 = vector.broadcast %288 : vector<8x1xf32> to vector<8x256xf32>
    %291 = vector.broadcast %289 : vector<1x256xf32> to vector<8x256xf32>
    %292 = arith.mulf %290, %291 : vector<8x256xf32>
    %293 = arith.addf %287, %292 : vector<8x256xf32>
    %294 = vector.extract_strided_slice %129 {offsets = [0, 2], sizes = [8, 1], strides = [1, 1]} : vector<8x8xf32> to vector<8x1xf32>
    %295 = vector.extract_strided_slice %280 {offsets = [2, 0], sizes = [1, 256], strides = [1, 1]} : vector<8x256xf32> to vector<1x256xf32>
    %296 = vector.broadcast %294 : vector<8x1xf32> to vector<8x256xf32>
    %297 = vector.broadcast %295 : vector<1x256xf32> to vector<8x256xf32>
    %298 = arith.mulf %296, %297 : vector<8x256xf32>
    %299 = arith.addf %293, %298 : vector<8x256xf32>
    %300 = vector.extract_strided_slice %129 {offsets = [0, 3], sizes = [8, 1], strides = [1, 1]} : vector<8x8xf32> to vector<8x1xf32>
    %301 = vector.extract_strided_slice %280 {offsets = [3, 0], sizes = [1, 256], strides = [1, 1]} : vector<8x256xf32> to vector<1x256xf32>
    %302 = vector.broadcast %300 : vector<8x1xf32> to vector<8x256xf32>
    %303 = vector.broadcast %301 : vector<1x256xf32> to vector<8x256xf32>
    %304 = arith.mulf %302, %303 : vector<8x256xf32>
    %305 = arith.addf %299, %304 : vector<8x256xf32>
    %306 = vector.extract_strided_slice %129 {offsets = [0, 4], sizes = [8, 1], strides = [1, 1]} : vector<8x8xf32> to vector<8x1xf32>
    %307 = vector.extract_strided_slice %280 {offsets = [4, 0], sizes = [1, 256], strides = [1, 1]} : vector<8x256xf32> to vector<1x256xf32>
    %308 = vector.broadcast %306 : vector<8x1xf32> to vector<8x256xf32>
    %309 = vector.broadcast %307 : vector<1x256xf32> to vector<8x256xf32>
    %310 = arith.mulf %308, %309 : vector<8x256xf32>
    %311 = arith.addf %305, %310 : vector<8x256xf32>
    %312 = vector.extract_strided_slice %129 {offsets = [0, 5], sizes = [8, 1], strides = [1, 1]} : vector<8x8xf32> to vector<8x1xf32>
    %313 = vector.extract_strided_slice %280 {offsets = [5, 0], sizes = [1, 256], strides = [1, 1]} : vector<8x256xf32> to vector<1x256xf32>
    %314 = vector.broadcast %312 : vector<8x1xf32> to vector<8x256xf32>
    %315 = vector.broadcast %313 : vector<1x256xf32> to vector<8x256xf32>
    %316 = arith.mulf %314, %315 : vector<8x256xf32>
    %317 = arith.addf %311, %316 : vector<8x256xf32>
    %318 = vector.extract_strided_slice %129 {offsets = [0, 6], sizes = [8, 1], strides = [1, 1]} : vector<8x8xf32> to vector<8x1xf32>
    %319 = vector.extract_strided_slice %280 {offsets = [6, 0], sizes = [1, 256], strides = [1, 1]} : vector<8x256xf32> to vector<1x256xf32>
    %320 = vector.broadcast %318 : vector<8x1xf32> to vector<8x256xf32>
    %321 = vector.broadcast %319 : vector<1x256xf32> to vector<8x256xf32>
    %322 = arith.mulf %320, %321 : vector<8x256xf32>
    %323 = arith.addf %317, %322 : vector<8x256xf32>
    %324 = vector.extract_strided_slice %129 {offsets = [0, 7], sizes = [8, 1], strides = [1, 1]} : vector<8x8xf32> to vector<8x1xf32>
    %325 = vector.extract_strided_slice %280 {offsets = [7, 0], sizes = [1, 256], strides = [1, 1]} : vector<8x256xf32> to vector<1x256xf32>
    %326 = vector.broadcast %324 : vector<8x1xf32> to vector<8x256xf32>
    %327 = vector.broadcast %325 : vector<1x256xf32> to vector<8x256xf32>
    %328 = arith.mulf %326, %327 : vector<8x256xf32>
    %329 = arith.addf %323, %328 : vector<8x256xf32>
    %330 = math.tanh %329 : vector<8x256xf32>
    %331 = vector.extract_strided_slice %129 {offsets = [0, 0], sizes = [8, 1], strides = [1, 1]} : vector<8x8xf32> to vector<8x1xf32>
    %332 = vector.extract_strided_slice %330 {offsets = [0, 0], sizes = [1, 256], strides = [1, 1]} : vector<8x256xf32> to vector<1x256xf32>
    %333 = vector.broadcast %331 : vector<8x1xf32> to vector<8x256xf32>
    %334 = vector.broadcast %332 : vector<1x256xf32> to vector<8x256xf32>
    %335 = arith.mulf %333, %334 : vector<8x256xf32>
    %336 = vector.broadcast %130 : vector<8x1xf32> to vector<8x256xf32>
    %337 = arith.addf %335, %336 : vector<8x256xf32>
    %338 = vector.extract_strided_slice %129 {offsets = [0, 1], sizes = [8, 1], strides = [1, 1]} : vector<8x8xf32> to vector<8x1xf32>
    %339 = vector.extract_strided_slice %330 {offsets = [1, 0], sizes = [1, 256], strides = [1, 1]} : vector<8x256xf32> to vector<1x256xf32>
    %340 = vector.broadcast %338 : vector<8x1xf32> to vector<8x256xf32>
    %341 = vector.broadcast %339 : vector<1x256xf32> to vector<8x256xf32>
    %342 = arith.mulf %340, %341 : vector<8x256xf32>
    %343 = arith.addf %337, %342 : vector<8x256xf32>
    %344 = vector.extract_strided_slice %129 {offsets = [0, 2], sizes = [8, 1], strides = [1, 1]} : vector<8x8xf32> to vector<8x1xf32>
    %345 = vector.extract_strided_slice %330 {offsets = [2, 0], sizes = [1, 256], strides = [1, 1]} : vector<8x256xf32> to vector<1x256xf32>
    %346 = vector.broadcast %344 : vector<8x1xf32> to vector<8x256xf32>
    %347 = vector.broadcast %345 : vector<1x256xf32> to vector<8x256xf32>
    %348 = arith.mulf %346, %347 : vector<8x256xf32>
    %349 = arith.addf %343, %348 : vector<8x256xf32>
    %350 = vector.extract_strided_slice %129 {offsets = [0, 3], sizes = [8, 1], strides = [1, 1]} : vector<8x8xf32> to vector<8x1xf32>
    %351 = vector.extract_strided_slice %330 {offsets = [3, 0], sizes = [1, 256], strides = [1, 1]} : vector<8x256xf32> to vector<1x256xf32>
    %352 = vector.broadcast %350 : vector<8x1xf32> to vector<8x256xf32>
    %353 = vector.broadcast %351 : vector<1x256xf32> to vector<8x256xf32>
    %354 = arith.mulf %352, %353 : vector<8x256xf32>
    %355 = arith.addf %349, %354 : vector<8x256xf32>
    %356 = vector.extract_strided_slice %129 {offsets = [0, 4], sizes = [8, 1], strides = [1, 1]} : vector<8x8xf32> to vector<8x1xf32>
    %357 = vector.extract_strided_slice %330 {offsets = [4, 0], sizes = [1, 256], strides = [1, 1]} : vector<8x256xf32> to vector<1x256xf32>
    %358 = vector.broadcast %356 : vector<8x1xf32> to vector<8x256xf32>
    %359 = vector.broadcast %357 : vector<1x256xf32> to vector<8x256xf32>
    %360 = arith.mulf %358, %359 : vector<8x256xf32>
    %361 = arith.addf %355, %360 : vector<8x256xf32>
    %362 = vector.extract_strided_slice %129 {offsets = [0, 5], sizes = [8, 1], strides = [1, 1]} : vector<8x8xf32> to vector<8x1xf32>
    %363 = vector.extract_strided_slice %330 {offsets = [5, 0], sizes = [1, 256], strides = [1, 1]} : vector<8x256xf32> to vector<1x256xf32>
    %364 = vector.broadcast %362 : vector<8x1xf32> to vector<8x256xf32>
    %365 = vector.broadcast %363 : vector<1x256xf32> to vector<8x256xf32>
    %366 = arith.mulf %364, %365 : vector<8x256xf32>
    %367 = arith.addf %361, %366 : vector<8x256xf32>
    %368 = vector.extract_strided_slice %129 {offsets = [0, 6], sizes = [8, 1], strides = [1, 1]} : vector<8x8xf32> to vector<8x1xf32>
    %369 = vector.extract_strided_slice %330 {offsets = [6, 0], sizes = [1, 256], strides = [1, 1]} : vector<8x256xf32> to vector<1x256xf32>
    %370 = vector.broadcast %368 : vector<8x1xf32> to vector<8x256xf32>
    %371 = vector.broadcast %369 : vector<1x256xf32> to vector<8x256xf32>
    %372 = arith.mulf %370, %371 : vector<8x256xf32>
    %373 = arith.addf %367, %372 : vector<8x256xf32>
    %374 = vector.extract_strided_slice %129 {offsets = [0, 7], sizes = [8, 1], strides = [1, 1]} : vector<8x8xf32> to vector<8x1xf32>
    %375 = vector.extract_strided_slice %330 {offsets = [7, 0], sizes = [1, 256], strides = [1, 1]} : vector<8x256xf32> to vector<1x256xf32>
    %376 = vector.broadcast %374 : vector<8x1xf32> to vector<8x256xf32>
    %377 = vector.broadcast %375 : vector<1x256xf32> to vector<8x256xf32>
    %378 = arith.mulf %376, %377 : vector<8x256xf32>
    %379 = arith.addf %373, %378 : vector<8x256xf32>
    %380 = math.tanh %379 : vector<8x256xf32>
    %381 = vector.extract_strided_slice %129 {offsets = [0, 0], sizes = [8, 1], strides = [1, 1]} : vector<8x8xf32> to vector<8x1xf32>
    %382 = vector.extract_strided_slice %380 {offsets = [0, 0], sizes = [1, 256], strides = [1, 1]} : vector<8x256xf32> to vector<1x256xf32>
    %383 = vector.broadcast %381 : vector<8x1xf32> to vector<8x256xf32>
    %384 = vector.broadcast %382 : vector<1x256xf32> to vector<8x256xf32>
    %385 = arith.mulf %383, %384 : vector<8x256xf32>
    %386 = vector.broadcast %130 : vector<8x1xf32> to vector<8x256xf32>
    %387 = arith.addf %385, %386 : vector<8x256xf32>
    %388 = vector.extract_strided_slice %129 {offsets = [0, 1], sizes = [8, 1], strides = [1, 1]} : vector<8x8xf32> to vector<8x1xf32>
    %389 = vector.extract_strided_slice %380 {offsets = [1, 0], sizes = [1, 256], strides = [1, 1]} : vector<8x256xf32> to vector<1x256xf32>
    %390 = vector.broadcast %388 : vector<8x1xf32> to vector<8x256xf32>
    %391 = vector.broadcast %389 : vector<1x256xf32> to vector<8x256xf32>
    %392 = arith.mulf %390, %391 : vector<8x256xf32>
    %393 = arith.addf %387, %392 : vector<8x256xf32>
    %394 = vector.extract_strided_slice %129 {offsets = [0, 2], sizes = [8, 1], strides = [1, 1]} : vector<8x8xf32> to vector<8x1xf32>
    %395 = vector.extract_strided_slice %380 {offsets = [2, 0], sizes = [1, 256], strides = [1, 1]} : vector<8x256xf32> to vector<1x256xf32>
    %396 = vector.broadcast %394 : vector<8x1xf32> to vector<8x256xf32>
    %397 = vector.broadcast %395 : vector<1x256xf32> to vector<8x256xf32>
    %398 = arith.mulf %396, %397 : vector<8x256xf32>
    %399 = arith.addf %393, %398 : vector<8x256xf32>
    %400 = vector.extract_strided_slice %129 {offsets = [0, 3], sizes = [8, 1], strides = [1, 1]} : vector<8x8xf32> to vector<8x1xf32>
    %401 = vector.extract_strided_slice %380 {offsets = [3, 0], sizes = [1, 256], strides = [1, 1]} : vector<8x256xf32> to vector<1x256xf32>
    %402 = vector.broadcast %400 : vector<8x1xf32> to vector<8x256xf32>
    %403 = vector.broadcast %401 : vector<1x256xf32> to vector<8x256xf32>
    %404 = arith.mulf %402, %403 : vector<8x256xf32>
    %405 = arith.addf %399, %404 : vector<8x256xf32>
    %406 = vector.extract_strided_slice %129 {offsets = [0, 4], sizes = [8, 1], strides = [1, 1]} : vector<8x8xf32> to vector<8x1xf32>
    %407 = vector.extract_strided_slice %380 {offsets = [4, 0], sizes = [1, 256], strides = [1, 1]} : vector<8x256xf32> to vector<1x256xf32>
    %408 = vector.broadcast %406 : vector<8x1xf32> to vector<8x256xf32>
    %409 = vector.broadcast %407 : vector<1x256xf32> to vector<8x256xf32>
    %410 = arith.mulf %408, %409 : vector<8x256xf32>
    %411 = arith.addf %405, %410 : vector<8x256xf32>
    %412 = vector.extract_strided_slice %129 {offsets = [0, 5], sizes = [8, 1], strides = [1, 1]} : vector<8x8xf32> to vector<8x1xf32>
    %413 = vector.extract_strided_slice %380 {offsets = [5, 0], sizes = [1, 256], strides = [1, 1]} : vector<8x256xf32> to vector<1x256xf32>
    %414 = vector.broadcast %412 : vector<8x1xf32> to vector<8x256xf32>
    %415 = vector.broadcast %413 : vector<1x256xf32> to vector<8x256xf32>
    %416 = arith.mulf %414, %415 : vector<8x256xf32>
    %417 = arith.addf %411, %416 : vector<8x256xf32>
    %418 = vector.extract_strided_slice %129 {offsets = [0, 6], sizes = [8, 1], strides = [1, 1]} : vector<8x8xf32> to vector<8x1xf32>
    %419 = vector.extract_strided_slice %380 {offsets = [6, 0], sizes = [1, 256], strides = [1, 1]} : vector<8x256xf32> to vector<1x256xf32>
    %420 = vector.broadcast %418 : vector<8x1xf32> to vector<8x256xf32>
    %421 = vector.broadcast %419 : vector<1x256xf32> to vector<8x256xf32>
    %422 = arith.mulf %420, %421 : vector<8x256xf32>
    %423 = arith.addf %417, %422 : vector<8x256xf32>
    %424 = vector.extract_strided_slice %129 {offsets = [0, 7], sizes = [8, 1], strides = [1, 1]} : vector<8x8xf32> to vector<8x1xf32>
    %425 = vector.extract_strided_slice %380 {offsets = [7, 0], sizes = [1, 256], strides = [1, 1]} : vector<8x256xf32> to vector<1x256xf32>
    %426 = vector.broadcast %424 : vector<8x1xf32> to vector<8x256xf32>
    %427 = vector.broadcast %425 : vector<1x256xf32> to vector<8x256xf32>
    %428 = arith.mulf %426, %427 : vector<8x256xf32>
    %429 = arith.addf %423, %428 : vector<8x256xf32>
    %430 = math.tanh %429 : vector<8x256xf32>
    %431 = vector.extract_strided_slice %129 {offsets = [0, 0], sizes = [8, 1], strides = [1, 1]} : vector<8x8xf32> to vector<8x1xf32>
    %432 = vector.extract_strided_slice %430 {offsets = [0, 0], sizes = [1, 256], strides = [1, 1]} : vector<8x256xf32> to vector<1x256xf32>
    %433 = vector.broadcast %431 : vector<8x1xf32> to vector<8x256xf32>
    %434 = vector.broadcast %432 : vector<1x256xf32> to vector<8x256xf32>
    %435 = arith.mulf %433, %434 : vector<8x256xf32>
    %436 = vector.broadcast %130 : vector<8x1xf32> to vector<8x256xf32>
    %437 = arith.addf %435, %436 : vector<8x256xf32>
    %438 = vector.extract_strided_slice %129 {offsets = [0, 1], sizes = [8, 1], strides = [1, 1]} : vector<8x8xf32> to vector<8x1xf32>
    %439 = vector.extract_strided_slice %430 {offsets = [1, 0], sizes = [1, 256], strides = [1, 1]} : vector<8x256xf32> to vector<1x256xf32>
    %440 = vector.broadcast %438 : vector<8x1xf32> to vector<8x256xf32>
    %441 = vector.broadcast %439 : vector<1x256xf32> to vector<8x256xf32>
    %442 = arith.mulf %440, %441 : vector<8x256xf32>
    %443 = arith.addf %437, %442 : vector<8x256xf32>
    %444 = vector.extract_strided_slice %129 {offsets = [0, 2], sizes = [8, 1], strides = [1, 1]} : vector<8x8xf32> to vector<8x1xf32>
    %445 = vector.extract_strided_slice %430 {offsets = [2, 0], sizes = [1, 256], strides = [1, 1]} : vector<8x256xf32> to vector<1x256xf32>
    %446 = vector.broadcast %444 : vector<8x1xf32> to vector<8x256xf32>
    %447 = vector.broadcast %445 : vector<1x256xf32> to vector<8x256xf32>
    %448 = arith.mulf %446, %447 : vector<8x256xf32>
    %449 = arith.addf %443, %448 : vector<8x256xf32>
    %450 = vector.extract_strided_slice %129 {offsets = [0, 3], sizes = [8, 1], strides = [1, 1]} : vector<8x8xf32> to vector<8x1xf32>
    %451 = vector.extract_strided_slice %430 {offsets = [3, 0], sizes = [1, 256], strides = [1, 1]} : vector<8x256xf32> to vector<1x256xf32>
    %452 = vector.broadcast %450 : vector<8x1xf32> to vector<8x256xf32>
    %453 = vector.broadcast %451 : vector<1x256xf32> to vector<8x256xf32>
    %454 = arith.mulf %452, %453 : vector<8x256xf32>
    %455 = arith.addf %449, %454 : vector<8x256xf32>
    %456 = vector.extract_strided_slice %129 {offsets = [0, 4], sizes = [8, 1], strides = [1, 1]} : vector<8x8xf32> to vector<8x1xf32>
    %457 = vector.extract_strided_slice %430 {offsets = [4, 0], sizes = [1, 256], strides = [1, 1]} : vector<8x256xf32> to vector<1x256xf32>
    %458 = vector.broadcast %456 : vector<8x1xf32> to vector<8x256xf32>
    %459 = vector.broadcast %457 : vector<1x256xf32> to vector<8x256xf32>
    %460 = arith.mulf %458, %459 : vector<8x256xf32>
    %461 = arith.addf %455, %460 : vector<8x256xf32>
    %462 = vector.extract_strided_slice %129 {offsets = [0, 5], sizes = [8, 1], strides = [1, 1]} : vector<8x8xf32> to vector<8x1xf32>
    %463 = vector.extract_strided_slice %430 {offsets = [5, 0], sizes = [1, 256], strides = [1, 1]} : vector<8x256xf32> to vector<1x256xf32>
    %464 = vector.broadcast %462 : vector<8x1xf32> to vector<8x256xf32>
    %465 = vector.broadcast %463 : vector<1x256xf32> to vector<8x256xf32>
    %466 = arith.mulf %464, %465 : vector<8x256xf32>
    %467 = arith.addf %461, %466 : vector<8x256xf32>
    %468 = vector.extract_strided_slice %129 {offsets = [0, 6], sizes = [8, 1], strides = [1, 1]} : vector<8x8xf32> to vector<8x1xf32>
    %469 = vector.extract_strided_slice %430 {offsets = [6, 0], sizes = [1, 256], strides = [1, 1]} : vector<8x256xf32> to vector<1x256xf32>
    %470 = vector.broadcast %468 : vector<8x1xf32> to vector<8x256xf32>
    %471 = vector.broadcast %469 : vector<1x256xf32> to vector<8x256xf32>
    %472 = arith.mulf %470, %471 : vector<8x256xf32>
    %473 = arith.addf %467, %472 : vector<8x256xf32>
    %474 = vector.extract_strided_slice %129 {offsets = [0, 7], sizes = [8, 1], strides = [1, 1]} : vector<8x8xf32> to vector<8x1xf32>
    %475 = vector.extract_strided_slice %430 {offsets = [7, 0], sizes = [1, 256], strides = [1, 1]} : vector<8x256xf32> to vector<1x256xf32>
    %476 = vector.broadcast %474 : vector<8x1xf32> to vector<8x256xf32>
    %477 = vector.broadcast %475 : vector<1x256xf32> to vector<8x256xf32>
    %478 = arith.mulf %476, %477 : vector<8x256xf32>
    %479 = arith.addf %473, %478 : vector<8x256xf32>
    %480 = math.tanh %479 : vector<8x256xf32>
    %481 = vector.extract_strided_slice %129 {offsets = [0, 0], sizes = [8, 1], strides = [1, 1]} : vector<8x8xf32> to vector<8x1xf32>
    %482 = vector.extract_strided_slice %480 {offsets = [0, 0], sizes = [1, 256], strides = [1, 1]} : vector<8x256xf32> to vector<1x256xf32>
    %483 = vector.broadcast %481 : vector<8x1xf32> to vector<8x256xf32>
    %484 = vector.broadcast %482 : vector<1x256xf32> to vector<8x256xf32>
    %485 = arith.mulf %483, %484 : vector<8x256xf32>
    %486 = vector.broadcast %130 : vector<8x1xf32> to vector<8x256xf32>
    %487 = arith.addf %485, %486 : vector<8x256xf32>
    %488 = vector.extract_strided_slice %129 {offsets = [0, 1], sizes = [8, 1], strides = [1, 1]} : vector<8x8xf32> to vector<8x1xf32>
    %489 = vector.extract_strided_slice %480 {offsets = [1, 0], sizes = [1, 256], strides = [1, 1]} : vector<8x256xf32> to vector<1x256xf32>
    %490 = vector.broadcast %488 : vector<8x1xf32> to vector<8x256xf32>
    %491 = vector.broadcast %489 : vector<1x256xf32> to vector<8x256xf32>
    %492 = arith.mulf %490, %491 : vector<8x256xf32>
    %493 = arith.addf %487, %492 : vector<8x256xf32>
    %494 = vector.extract_strided_slice %129 {offsets = [0, 2], sizes = [8, 1], strides = [1, 1]} : vector<8x8xf32> to vector<8x1xf32>
    %495 = vector.extract_strided_slice %480 {offsets = [2, 0], sizes = [1, 256], strides = [1, 1]} : vector<8x256xf32> to vector<1x256xf32>
    %496 = vector.broadcast %494 : vector<8x1xf32> to vector<8x256xf32>
    %497 = vector.broadcast %495 : vector<1x256xf32> to vector<8x256xf32>
    %498 = arith.mulf %496, %497 : vector<8x256xf32>
    %499 = arith.addf %493, %498 : vector<8x256xf32>
    %500 = vector.extract_strided_slice %129 {offsets = [0, 3], sizes = [8, 1], strides = [1, 1]} : vector<8x8xf32> to vector<8x1xf32>
    %501 = vector.extract_strided_slice %480 {offsets = [3, 0], sizes = [1, 256], strides = [1, 1]} : vector<8x256xf32> to vector<1x256xf32>
    %502 = vector.broadcast %500 : vector<8x1xf32> to vector<8x256xf32>
    %503 = vector.broadcast %501 : vector<1x256xf32> to vector<8x256xf32>
    %504 = arith.mulf %502, %503 : vector<8x256xf32>
    %505 = arith.addf %499, %504 : vector<8x256xf32>
    %506 = vector.extract_strided_slice %129 {offsets = [0, 4], sizes = [8, 1], strides = [1, 1]} : vector<8x8xf32> to vector<8x1xf32>
    %507 = vector.extract_strided_slice %480 {offsets = [4, 0], sizes = [1, 256], strides = [1, 1]} : vector<8x256xf32> to vector<1x256xf32>
    %508 = vector.broadcast %506 : vector<8x1xf32> to vector<8x256xf32>
    %509 = vector.broadcast %507 : vector<1x256xf32> to vector<8x256xf32>
    %510 = arith.mulf %508, %509 : vector<8x256xf32>
    %511 = arith.addf %505, %510 : vector<8x256xf32>
    %512 = vector.extract_strided_slice %129 {offsets = [0, 5], sizes = [8, 1], strides = [1, 1]} : vector<8x8xf32> to vector<8x1xf32>
    %513 = vector.extract_strided_slice %480 {offsets = [5, 0], sizes = [1, 256], strides = [1, 1]} : vector<8x256xf32> to vector<1x256xf32>
    %514 = vector.broadcast %512 : vector<8x1xf32> to vector<8x256xf32>
    %515 = vector.broadcast %513 : vector<1x256xf32> to vector<8x256xf32>
    %516 = arith.mulf %514, %515 : vector<8x256xf32>
    %517 = arith.addf %511, %516 : vector<8x256xf32>
    %518 = vector.extract_strided_slice %129 {offsets = [0, 6], sizes = [8, 1], strides = [1, 1]} : vector<8x8xf32> to vector<8x1xf32>
    %519 = vector.extract_strided_slice %480 {offsets = [6, 0], sizes = [1, 256], strides = [1, 1]} : vector<8x256xf32> to vector<1x256xf32>
    %520 = vector.broadcast %518 : vector<8x1xf32> to vector<8x256xf32>
    %521 = vector.broadcast %519 : vector<1x256xf32> to vector<8x256xf32>
    %522 = arith.mulf %520, %521 : vector<8x256xf32>
    %523 = arith.addf %517, %522 : vector<8x256xf32>
    %524 = vector.extract_strided_slice %129 {offsets = [0, 7], sizes = [8, 1], strides = [1, 1]} : vector<8x8xf32> to vector<8x1xf32>
    %525 = vector.extract_strided_slice %480 {offsets = [7, 0], sizes = [1, 256], strides = [1, 1]} : vector<8x256xf32> to vector<1x256xf32>
    %526 = vector.broadcast %524 : vector<8x1xf32> to vector<8x256xf32>
    %527 = vector.broadcast %525 : vector<1x256xf32> to vector<8x256xf32>
    %528 = arith.mulf %526, %527 : vector<8x256xf32>
    %529 = arith.addf %523, %528 : vector<8x256xf32>
    %530 = math.tanh %529 : vector<8x256xf32>
    %531 = vector.extract_strided_slice %129 {offsets = [0, 0], sizes = [8, 1], strides = [1, 1]} : vector<8x8xf32> to vector<8x1xf32>
    %532 = vector.extract_strided_slice %530 {offsets = [0, 0], sizes = [1, 256], strides = [1, 1]} : vector<8x256xf32> to vector<1x256xf32>
    %533 = vector.broadcast %531 : vector<8x1xf32> to vector<8x256xf32>
    %534 = vector.broadcast %532 : vector<1x256xf32> to vector<8x256xf32>
    %535 = arith.mulf %533, %534 : vector<8x256xf32>
    %536 = vector.broadcast %130 : vector<8x1xf32> to vector<8x256xf32>
    %537 = arith.addf %535, %536 : vector<8x256xf32>
    %538 = vector.extract_strided_slice %129 {offsets = [0, 1], sizes = [8, 1], strides = [1, 1]} : vector<8x8xf32> to vector<8x1xf32>
    %539 = vector.extract_strided_slice %530 {offsets = [1, 0], sizes = [1, 256], strides = [1, 1]} : vector<8x256xf32> to vector<1x256xf32>
    %540 = vector.broadcast %538 : vector<8x1xf32> to vector<8x256xf32>
    %541 = vector.broadcast %539 : vector<1x256xf32> to vector<8x256xf32>
    %542 = arith.mulf %540, %541 : vector<8x256xf32>
    %543 = arith.addf %537, %542 : vector<8x256xf32>
    %544 = vector.extract_strided_slice %129 {offsets = [0, 2], sizes = [8, 1], strides = [1, 1]} : vector<8x8xf32> to vector<8x1xf32>
    %545 = vector.extract_strided_slice %530 {offsets = [2, 0], sizes = [1, 256], strides = [1, 1]} : vector<8x256xf32> to vector<1x256xf32>
    %546 = vector.broadcast %544 : vector<8x1xf32> to vector<8x256xf32>
    %547 = vector.broadcast %545 : vector<1x256xf32> to vector<8x256xf32>
    %548 = arith.mulf %546, %547 : vector<8x256xf32>
    %549 = arith.addf %543, %548 : vector<8x256xf32>
    %550 = vector.extract_strided_slice %129 {offsets = [0, 3], sizes = [8, 1], strides = [1, 1]} : vector<8x8xf32> to vector<8x1xf32>
    %551 = vector.extract_strided_slice %530 {offsets = [3, 0], sizes = [1, 256], strides = [1, 1]} : vector<8x256xf32> to vector<1x256xf32>
    %552 = vector.broadcast %550 : vector<8x1xf32> to vector<8x256xf32>
    %553 = vector.broadcast %551 : vector<1x256xf32> to vector<8x256xf32>
    %554 = arith.mulf %552, %553 : vector<8x256xf32>
    %555 = arith.addf %549, %554 : vector<8x256xf32>
    %556 = vector.extract_strided_slice %129 {offsets = [0, 4], sizes = [8, 1], strides = [1, 1]} : vector<8x8xf32> to vector<8x1xf32>
    %557 = vector.extract_strided_slice %530 {offsets = [4, 0], sizes = [1, 256], strides = [1, 1]} : vector<8x256xf32> to vector<1x256xf32>
    %558 = vector.broadcast %556 : vector<8x1xf32> to vector<8x256xf32>
    %559 = vector.broadcast %557 : vector<1x256xf32> to vector<8x256xf32>
    %560 = arith.mulf %558, %559 : vector<8x256xf32>
    %561 = arith.addf %555, %560 : vector<8x256xf32>
    %562 = vector.extract_strided_slice %129 {offsets = [0, 5], sizes = [8, 1], strides = [1, 1]} : vector<8x8xf32> to vector<8x1xf32>
    %563 = vector.extract_strided_slice %530 {offsets = [5, 0], sizes = [1, 256], strides = [1, 1]} : vector<8x256xf32> to vector<1x256xf32>
    %564 = vector.broadcast %562 : vector<8x1xf32> to vector<8x256xf32>
    %565 = vector.broadcast %563 : vector<1x256xf32> to vector<8x256xf32>
    %566 = arith.mulf %564, %565 : vector<8x256xf32>
    %567 = arith.addf %561, %566 : vector<8x256xf32>
    %568 = vector.extract_strided_slice %129 {offsets = [0, 6], sizes = [8, 1], strides = [1, 1]} : vector<8x8xf32> to vector<8x1xf32>
    %569 = vector.extract_strided_slice %530 {offsets = [6, 0], sizes = [1, 256], strides = [1, 1]} : vector<8x256xf32> to vector<1x256xf32>
    %570 = vector.broadcast %568 : vector<8x1xf32> to vector<8x256xf32>
    %571 = vector.broadcast %569 : vector<1x256xf32> to vector<8x256xf32>
    %572 = arith.mulf %570, %571 : vector<8x256xf32>
    %573 = arith.addf %567, %572 : vector<8x256xf32>
    %574 = vector.extract_strided_slice %129 {offsets = [0, 7], sizes = [8, 1], strides = [1, 1]} : vector<8x8xf32> to vector<8x1xf32>
    %575 = vector.extract_strided_slice %530 {offsets = [7, 0], sizes = [1, 256], strides = [1, 1]} : vector<8x256xf32> to vector<1x256xf32>
    %576 = vector.broadcast %574 : vector<8x1xf32> to vector<8x256xf32>
    %577 = vector.broadcast %575 : vector<1x256xf32> to vector<8x256xf32>
    %578 = arith.mulf %576, %577 : vector<8x256xf32>
    %579 = arith.addf %573, %578 : vector<8x256xf32>
    %580 = math.tanh %579 : vector<8x256xf32>
    %c0_15 = arith.constant 0 : index
    %c0_16 = arith.constant 0 : index
    %581 = vector.load %arg9[%c0_15, %c0_16] : memref<16x3xf32, #tpu.memory_space<vmem>>, vector<16x3xf32>
    %c0_17 = arith.constant 0 : index
    %c0_18 = arith.constant 0 : index
    %582 = vector.load %arg10[%c0_17, %c0_18] : memref<16x1xf32, #tpu.memory_space<vmem>>, vector<16x1xf32>
    %583 = vector.extract_strided_slice %580 {offsets = [0, 0], sizes = [3, 256], strides = [1, 1]} : vector<8x256xf32> to vector<3x256xf32>
    %584 = vector.extract_strided_slice %581 {offsets = [0, 0], sizes = [16, 1], strides = [1, 1]} : vector<16x3xf32> to vector<16x1xf32>
    %585 = vector.extract_strided_slice %583 {offsets = [0, 0], sizes = [1, 256], strides = [1, 1]} : vector<3x256xf32> to vector<1x256xf32>
    %586 = vector.broadcast %584 : vector<16x1xf32> to vector<16x256xf32>
    %587 = vector.broadcast %585 : vector<1x256xf32> to vector<16x256xf32>
    %588 = arith.mulf %586, %587 : vector<16x256xf32>
    %589 = vector.broadcast %582 : vector<16x1xf32> to vector<16x256xf32>
    %590 = arith.addf %588, %589 : vector<16x256xf32>
    %591 = vector.extract_strided_slice %581 {offsets = [0, 1], sizes = [16, 1], strides = [1, 1]} : vector<16x3xf32> to vector<16x1xf32>
    %592 = vector.extract_strided_slice %583 {offsets = [1, 0], sizes = [1, 256], strides = [1, 1]} : vector<3x256xf32> to vector<1x256xf32>
    %593 = vector.broadcast %591 : vector<16x1xf32> to vector<16x256xf32>
    %594 = vector.broadcast %592 : vector<1x256xf32> to vector<16x256xf32>
    %595 = arith.mulf %593, %594 : vector<16x256xf32>
    %596 = arith.addf %590, %595 : vector<16x256xf32>
    %597 = vector.extract_strided_slice %581 {offsets = [0, 2], sizes = [16, 1], strides = [1, 1]} : vector<16x3xf32> to vector<16x1xf32>
    %598 = vector.extract_strided_slice %583 {offsets = [2, 0], sizes = [1, 256], strides = [1, 1]} : vector<3x256xf32> to vector<1x256xf32>
    %599 = vector.broadcast %597 : vector<16x1xf32> to vector<16x256xf32>
    %600 = vector.broadcast %598 : vector<1x256xf32> to vector<16x256xf32>
    %601 = arith.mulf %599, %600 : vector<16x256xf32>
    %602 = arith.addf %596, %601 : vector<16x256xf32>
    %603 = math.tanh %602 : vector<16x256xf32>
    %cst_19 = arith.constant 5.000000e-01 : f32
    %604 = vector.broadcast %cst_19 : f32 to vector<16x256xf32>
    %605 = arith.mulf %604, %603 : vector<16x256xf32>
    %cst_20 = arith.constant 5.000000e-01 : f32
    %606 = vector.broadcast %cst_20 : f32 to vector<16x256xf32>
    %607 = arith.addf %605, %606 : vector<16x256xf32>
    %c0_21 = arith.constant 0 : index
    %c0_22 = arith.constant 0 : index
    %c0_23 = arith.constant 0 : index
    %608 = vector.load %arg11[%c0_21, %c0_22, %c0_23] : memref<1x16x256xf32, #tpu.memory_space<vmem>>, vector<1x16x256xf32>
    %609 = vector.shape_cast %608 : vector<1x16x256xf32> to vector<16x256xf32>
    %610 = vector.shape_cast %607 : vector<16x256xf32> to vector<1x16x256xf32>
    tpu.vector_store %arg11[%c0_21, %c0_22, %c0_23], %610 {strides = array<i32>} : memref<1x16x256xf32, #tpu.memory_space<vmem>>, vector<1x16x256xf32>,
    return
  }
  func.func @transform_0(%arg0: i32, %arg1: i32) -> (i32, i32, i32) {
    %c0_i32 = arith.constant 0 : i32
    %c0_i32_0 = arith.constant 0 : i32
    return %arg0, %c0_i32, %arg1 : i32, i32, i32
  }
  func.func @transform_1(%arg0: i32, %arg1: i32) -> (i32, i32) {
    %c0_i32 = arith.constant 0 : i32
    %c0_i32_0 = arith.constant 0 : i32
    %c0_i32_1 = arith.constant 0 : i32
    return %c0_i32, %c0_i32_0 : i32, i32
  }
  func.func @transform_2(%arg0: i32, %arg1: i32) -> (i32, i32) {
    %c0_i32 = arith.constant 0 : i32
    %c0_i32_0 = arith.constant 0 : i32
    %c0_i32_1 = arith.constant 0 : i32
    return %c0_i32, %c0_i32_0 : i32, i32
  }
  func.func @transform_3(%arg0: i32, %arg1: i32) -> (i32, i32) {
    %c0_i32 = arith.constant 0 : i32
    %c0_i32_0 = arith.constant 0 : i32
    %c0_i32_1 = arith.constant 0 : i32
    return %c0_i32, %c0_i32_0 : i32, i32
  }
  func.func @transform_4(%arg0: i32, %arg1: i32) -> (i32, i32) {
    %c0_i32 = arith.constant 0 : i32
    %c0_i32_0 = arith.constant 0 : i32
    %c0_i32_1 = arith.constant 0 : i32
    return %c0_i32, %c0_i32_0 : i32, i32
  }
  func.func @transform_5(%arg0: i32, %arg1: i32) -> (i32, i32) {
    %c0_i32 = arith.constant 0 : i32
    %c0_i32_0 = arith.constant 0 : i32
    %c0_i32_1 = arith.constant 0 : i32
    return %c0_i32, %c0_i32_0 : i32, i32
  }
  func.func @transform_6(%arg0: i32, %arg1: i32) -> (i32, i32) {
    %c0_i32 = arith.constant 0 : i32
    %c0_i32_0 = arith.constant 0 : i32
    %c0_i32_1 = arith.constant 0 : i32
    return %c0_i32, %c0_i32_0 : i32, i32
  }
  func.func @transform_7(%arg0: i32, %arg1: i32) -> (i32, i32) {
    %c0_i32 = arith.constant 0 : i32
    %c0_i32_0 = arith.constant 0 : i32
    %c0_i32_1 = arith.constant 0 : i32
    return %c0_i32, %c0_i32_0 : i32, i32
  }
  func.func @transform_8(%arg0: i32, %arg1: i32) -> (i32, i32) {
    %c0_i32 = arith.constant 0 : i32
    %c0_i32_0 = arith.constant 0 : i32
    %c0_i32_1 = arith.constant 0 : i32
    return %c0_i32, %c0_i32_0 : i32, i32
  }
  func.func @transform_9(%arg0: i32, %arg1: i32) -> (i32, i32, i32) {
    %c0_i32 = arith.constant 0 : i32
    %c0_i32_0 = arith.constant 0 : i32
    return %arg0, %c0_i32, %arg1 : i32, i32, i32
  }
}

</mosaic_0001>

<bundles_post_ra>
// kernel: tpu_custom_call.1
= control target key start
LH: loop header
LB: loop body
LE: loop exit
PB: predicated region body
PF: predicated region fallthrough
CT: control target
= control target key end

     0   :  { %14 = vsyncpa [#allocation3], 0  ;;  %s2823_s0 = inlined_call_operand.vmem [shape: f32[2,3,256], index: 0, kind: input, shape index: {}]   ;;  %s2824_s1 = inlined_call_operand.vmem [shape: f32[16,3], index: 1, kind: input, shape index: {}]   ;;  %s2825_s2 = inlined_call_operand.vmem [shape: f32[16,1], index: 2, kind: input, shape index: {}]   ;;  %s2826_s3 = inlined_call_operand.vmem [shape: f32[8,16], index: 3, kind: input, shape index: {}]   ;;  %s2827_s4 = inlined_call_operand.vmem [shape: f32[8,1], index: 4, kind: input, shape index: {}]   ;;  %s2828_s5 = inlined_call_operand.vmem [shape: f32[8,8], index: 5, kind: input, shape index: {}]   ;;  %s2829_s6 = inlined_call_operand.vmem [shape: f32[8,1], index: 6, kind: input, shape index: {}]   ;;  %s2830_s7 = inlined_call_operand.vmem [shape: f32[16,3], index: 7, kind: input, shape index: {}]   ;;  %s2831_s8 = inlined_call_operand.vmem [shape: f32[16,1], index: 8, kind: input, shape index: {}]   ;;  %s2832_s9 = inlined_call_operand.hbm [shape: f32[2,16,256], index: 9, kind: output, shape index: {}]  }
   0x1   :  { %16 = vsyncpa [#allocation3 + $0x1], 0  ;;  %s2223_s30 = smov 0   ;;  %s2225_s10 = smov 0  }
   0x2   :  { %s2227_s11 = smov 0   ;;  %s2229_s12 = smov 0  }
   0x3   :  { %s2231_s13 = smov 0   ;;  %s2233_s14 = smov 0  }
   0x4 LB: > { %s1885_s15 = sadd.s32 4294967295, %s2152_s14   ;;  %s1886_s16 = sadd.s32 4294967294, %s2152_s14   ;;  %s2152_s14 = sphi %s2233_s14, %s22_s14   ;;  %s2148_s13 = sphi %s2231_s13, %s2839_s13   ;;  %s2144_s12 = sphi %s2229_s12, %s2838_s12   ;;  %s2140_s11 = sphi %s2227_s11, %s2837_s11   ;;  %s2136_s10 = sphi %s2225_s10, %s2836_s10   ;;  %s2132_s30 = sphi %s2223_s30, %s2835_s30  }
   0x5   : > { %s34_s17 = sadd.s32 1, %s2148_s13  ;;  %s239_s18 = sadd.s32 1, %s2140_s11 }
   0x6   : > { %p36_p0 = scmp.ge.s32.totalorder %s34_s17, 2  ;;  %p249_p1 = scmp.ne.s32.totalorder %s2140_s11, %s2136_s10 }
   0x7   : > { %p250_p2 = scmp.eq.s32.totalorder %s1885_s15, 1  ;;  %p255_p3 = scmp.ne.s32.totalorder %s2136_s10, %s2132_s30 }
   0x8   : > { %s2841_s17 = smov (%p36_p0, %s34_s17), 0  ;;  %p256_p5 = scmp.eq.s32.totalorder %s1886_s16, 1 }
   0x9   : > { %p2263_p4 = por %p250_p2, %p249_p1  ;;  %s234_s20 = ssub.s32 %s2148_s13, %s2841_s17 }
   0xa   : > { %p1889_p6 = scmp.ge.s32.totalorder %s2152_s14, 1  ;;  %p237_p7 = scmp.eq.s32.totalorder %s234_s20, 0 }
   0xb   : > { %p2270_p8 = por %p256_p5, %p255_p3  ;;  %p311_p9 = scmp.lt.s32.totalorder %s2152_s14, 3 }
   0xc   : > { %s2276_s22 = scalar_select %p237_p7, %s2140_s11, %s239_s18  }
   0xd   : > { %p312_p10 = pnand %p1889_p6, %p311_p9 }
   0xe   : > { %v363_v0 = vld [vmem:[%s2824_s1] sm:$0xff] (!%p312_p10)  ;;  %v2154_v1 = vmov (!%p312_p10), 1   ;;  %v2155_v2 = vmov (!%p312_p10), 0   ;;  %v2156_v4 = vmov (!%p312_p10), 2   ;;  %v364_v5 = vld [vmem:[%s2824_s1 + $0x8] sm:$0xff] (!%p312_p10)  ;;  %v2157_v9 = vmov (!%p312_p10), 3  }
   0xf   : > { %315 = sbr.rel (%p312_p10) target bundleno = 553 (0x229), region = 56  ;;  %1974 = vset.pattern.permute.xlu1 (!%p312_p10), %v2154_v1  ;;  %1973 = vset.pattern.permute.xlu0 (!%p312_p10), %v2155_v2  ;;  %v365_v3 = vld [vmem:[%s2825_s2] sm:$0xff] (!%p312_p10)  ;;  %v366_v6 = vld [vmem:[%s2825_s2 + $0x8] sm:$0xff] (!%p312_p10)  ;;  %v2158_v10 = vmov (!%p312_p10), 6   ;;  %v2159_v11 = vmov (!%p312_p10), 9   ;;  %v2160_v12 = vmov (!%p312_p10), 4   ;;  %v378_v24 = vlaneseq (!%p312_p10) }
  0x10   : > { %415 = vperm.xlu1 (!%p312_p10), %1974, %v363_v0   ;;  %369 = vperm.xlu0 (!%p312_p10), %1973, %v363_v0   ;;  %v499_v7 = vld [vmem:[%s2827_s4] sm:$0xff] (!%p312_p10)  ;;  %v2161_v13 = vmov (!%p312_p10), 12   ;;  %v2162_v14 = vmov (!%p312_p10), 5   ;;  %v2163_v15 = vmov (!%p312_p10), 15   ;;  %v2164_v16 = vmov (!%p312_p10), 7   ;;  %p352_p11 = scmp.lt.s32.totalorder (!%p312_p10), %s2144_s12, 1 }
  0x11   : > { %v498_v8 = vld [vmem:[%s2826_s3] sm:$0xff] (!%p312_p10)  ;;  %v2165_v18 = vmov (!%p312_p10), 8   ;;  %v2166_v19 = vmov (!%p312_p10), 10   ;;  %v2167_v20 = vmov (!%p312_p10), 11   ;;  %v2168_v21 = vmov (!%p312_p10), 13   ;;  %s348_s15 = sand.u32 (!%p312_p10), 1, %s2136_s10  }
  0x12   : > { %v764_v17 = vld [vmem:[%s2828_s5] sm:$0xff] (!%p312_p10)  ;;  %v2169_v22 = vmov (!%p312_p10), 14   ;;  %v2319_v25 = vshrl.u32 (!%p312_p10), %v378_v24, 7  ;;  %s1890_s16 = sshll.u32 (!%p312_p10), %s348_s15, 5 }
  0x13   : > { %v765_v23 = vld [vmem:[%s2829_s6] sm:$0xff] (!%p312_p10)  ;;  %s350_s20 = scalar_lea.vmem (!%p312_p10), [#allocation2], %s1890_s16 }
  0x14   : > { %1975 = vset.pattern.permute.xlu1 (!%p312_p10), %v2156_v4  ;;  %402 = vperm.xlu0 (!%p312_p10), %1973, %v365_v3   ;;  %v2325_v26 = vsub.s32 (!%p312_p10), 0, %v2319_v25  ;;  %v2328_v27 = vsub.s32 (!%p312_p10), 4, %v2319_v25  ;;  %v2331_v29 = vsub.s32 (!%p312_p10), 1, %v2319_v25  ;;  %v2334_v30 = vsub.s32 (!%p312_p10), 5, %v2319_v25  ;;  %s1806_s23 = sshll.u32 (!%p312_p10), %s350_s20, 4  ;;  %s2775_s23 = int_to_ptr.vmem [resolvable:$true] %s1806_s23 }
  0x15   : > { %449 = vperm.xlu1 (!%p312_p10), %1975, %v363_v0   ;;  %v2339_v33 = vsub.s32 (!%p312_p10), 2, %v2319_v25  ;;  %v2342_v34 = vsub.s32 (!%p312_p10), 6, %v2319_v25  ;;  %s2074_s27 = scalar_lea.vmem (!%p312_p10), %s2775_s23, 512 }
  0x16   : > { %s353_s28 = scalar_select %p352_p11, %s2144_s12, 1 }
  0x17   : > { %p2075_p12 = scmp.ne.s32.totalorder %s2775_s23, %s2074_s27 }
  0x18   : > { %374 = vperm.xlu0 %1973, %v364_v5   ;;  %s1898_s29 = sshll.u32 %s353_s28, 3  ;;  %s2170_s28 = smov [#allocation2]  }
  0x19   : > { %1976 = vset.pattern.permute.xlu1 %v2155_v2  ;;  %s359_s18 = scalar_lea.vmem %s2823_s0, %s1898_s29  ;;  %p2076_p13 = pnand %p2075_p12, %p2263_p4 }
  0x1a   : > { %407 = vperm.xlu1 %1976, %v366_v6   ;;  %v362_v28 = vld [vmem:[%s359_s18] sm:$0x77]  ;;  %s1899_s18 = sshll.u32 %s2144_s12, 9  ;;  %s2777_s12 = scalar_lea.sflag [#allocation3], %s348_s15 }
  0x1b   : > { %v381_v31 = vrot.slane %v362_v28, %v2325_v26  ;;  %v385_v32 = vrot.slane %v362_v28, %v2328_v27  ;;  %v425_v35 = vrot.slane %v362_v28, %v2331_v29  ;;  %v429_v36 = vrot.slane %v362_v28, %v2334_v30  ;;  %s2773_s26 = scalar_lea.hbm %s2832_s9, %s1899_s18  ;;  %p2077_p0 = pneg %p2076_p13 }
  0x1c   : > { %1977 = vset.pattern.permute.xlu0 %v2154_v1  ;;  %v459_v39 = vrot.slane %v362_v28, %v2339_v33  ;;  %v463_v40 = vrot.slane %v362_v28, %v2342_v34  ;;  %s2078_s29 = sshll.u32 %s2170_s28, 4  ;;  %s2079_s29 = int_to_ptr.vmem [resolvable:$false] %s2078_s29 }
  0x1d   : > { %419 = vperm.xlu0 %1977, %v364_v5   ;;  %v391_v37 = vrot.slane %v381_v31, %v2325_v26  ;;  %v395_v38 = vrot.slane %v385_v32, %v2325_v26  ;;  %v435_v43 = vrot.slane %v425_v35, %v2331_v29  ;;  %v439_v44 = vrot.slane %v429_v36, %v2331_v29  ;;  %s2080_s16 = scalar_lea.vmem %s2079_s29, 1024  ;;  %p2081_p1 = scmp.lt.s32.totalorder %s2775_s23, %s2079_s29 }
  0x1e   : > { %1978 = vset.pattern.permute.xlu1 %v2156_v4  ;;  %v469_v47 = vrot.slane %v459_v39, %v2339_v33  ;;  %v473_v48 = vrot.slane %v463_v40, %v2339_v33  ;;  %p2082_p2 = scmp.lt.s32.totalorder %s2080_s16, %s2074_s27 }
  0x1f   : > { %453 = vperm.xlu1 %1978, %v364_v5  }
  0x20   : > { %p2083_p3 = por %p2082_p2, %p2081_p1 }
  0x21   : > { %1980 = vset.pattern.permute.xlu0 %v2155_v2 }
  0x22   : > { %517 = vperm.xlu0 %1980, %v499_v7   ;;  %p2084_p5 = pnand %p2083_p3, %p2077_p0 }
  0x23   : > { %1979 = vset.pattern.permute.xlu1 %v2155_v2 }
  0x24   : > { %502 = vperm.xlu1 %1979, %v498_v8  }
  0x26   : > { %1983 = vset.pattern.permute.xlu0 %v2157_v9 }
  0x27   : > { %555 = vperm.xlu0 %1983, %v498_v8  }
  0x28   : > { %1981 = vset.pattern.permute.xlu1 %v2154_v1 }
  0x29   : > { %523 = vperm.xlu1 %1981, %v498_v8  }
  0x2b   : > { %1986 = vset.pattern.permute.xlu0 %v2158_v10 }
  0x2c   : > { %603 = vperm.xlu0 %1986, %v498_v8  }
  0x2d   : > { %1982 = vset.pattern.permute.xlu1 %v2156_v4 }
  0x2e   : > { %539 = vperm.xlu1 %1982, %v498_v8  }
  0x30   : > { %1989 = vset.pattern.permute.xlu0 %v2159_v11 }
  0x31   : > { %651 = vperm.xlu0 %1989, %v498_v8  }
  0x32   : > { %1984 = vset.pattern.permute.xlu1 %v2160_v12 }
  0x33   : > { %571 = vperm.xlu1 %1984, %v498_v8  }
  0x35   : > { %1992 = vset.pattern.permute.xlu0 %v2161_v13 }
  0x36   : > { %699 = vperm.xlu0 %1992, %v498_v8  }
  0x37   : > { %1985 = vset.pattern.permute.xlu1 %v2162_v14 }
  0x38   : > { %587 = vperm.xlu1 %1985, %v498_v8  }
  0x3a   : > { %1995 = vset.pattern.permute.xlu0 %v2163_v15 }
  0x3b   : > { %747 = vperm.xlu0 %1995, %v498_v8  }
  0x3c   : > { %1987 = vset.pattern.permute.xlu1 %v2164_v16 }
  0x3d   : > { %619 = vperm.xlu1 %1987, %v498_v8  }
  0x3f   : > { %1997 = vset.pattern.permute.xlu0 %v2154_v1 }
  0x40   : > { %789 = vperm.xlu0 %1997, %v764_v17  }
  0x41   : > { %1988 = vset.pattern.permute.xlu1 %v2165_v18 }
  0x42   : > { %635 = vperm.xlu1 %1988, %v498_v8  }
  0x44   : > { %2000 = vset.pattern.permute.xlu0 %v2160_v12 }
  0x45   : > { %837 = vperm.xlu0 %2000, %v764_v17  }
  0x46   : > { %1990 = vset.pattern.permute.xlu1 %v2166_v19 }
  0x47   : > { %667 = vperm.xlu1 %1990, %v498_v8  }
  0x49   : > { %2003 = vset.pattern.permute.xlu0 %v2164_v16 }
  0x4a   : > { %885 = vperm.xlu0 %2003, %v764_v17  }
  0x4b   : > { %1991 = vset.pattern.permute.xlu1 %v2167_v20 }
  0x4c   : > { %683 = vperm.xlu1 %1991, %v498_v8  }
  0x4e   : > { %2005 = vset.pattern.permute.xlu0 %v2155_v2 }
  0x50   : > { %1993 = vset.pattern.permute.xlu1 %v2168_v21 }
  0x51   : > { %715 = vperm.xlu1 %1993, %v498_v8  }
  0x55   : > { %1994 = vset.pattern.permute.xlu1 %v2169_v22 }
  0x56   : > { %731 = vperm.xlu1 %1994, %v498_v8  }
  0x5a   : > { %1996 = vset.pattern.permute.xlu1 %v2155_v2 }
  0x5b   : > { %768 = vperm.xlu1 %1996, %v764_v17  }
  0x5f   : > { %783 = vperm.xlu1 %1996, %v765_v23  }
  0x63   : > { %1998 = vset.pattern.permute.xlu1 %v2156_v4 }
  0x64   : > { %805 = vperm.xlu1 %1998, %v764_v17  }
  0x68   : > { %1999 = vset.pattern.permute.xlu1 %v2157_v9 }
  0x69   : > { %821 = vperm.xlu1 %1999, %v764_v17  }
  0x6d   : > { %2001 = vset.pattern.permute.xlu1 %v2162_v14 }
  0x6e   : > { %853 = vperm.xlu1 %2001, %v764_v17  }
  0x72   : > { %2002 = vset.pattern.permute.xlu1 %v2158_v10 }
  0x73   : > { %869 = vperm.xlu1 %2002, %v764_v17  }
  0x77   : > { %2004 = vset.pattern.permute.xlu1 %v2155_v2 }
  0x8f   : > { %v416_v41 = vpop.permute.xlu1 %415  ;;  %v370_v42 = vpop.permute.xlu0 %369 }
  0x90   : > { %v396_v45 = vmul.f32 %v391_v37, %v370_v42  ;;  %v397_v46 = vmul.f32 %v395_v38, %v370_v42  ;;  %v440_v50 = vmul.f32 %v435_v43, %v416_v41  ;;  %v441_v51 = vmul.f32 %v439_v44, %v416_v41 }
  0x91   : > { %v2359_v42 = vsub.s32 3, %v2319_v25 }
  0x93   : > { %v403_v49 = vpop.permute.xlu0 %402 }
  0x94   : > { %v410_v52 = vadd.f32 %v403_v49, %v396_v45  ;;  %v411_v53 = vadd.f32 %v403_v49, %v397_v46  ;;  %v450_v54 = vpop.permute.xlu1 %449 }
  0x95   : > { %v474_v55 = vmul.f32 %v469_v47, %v450_v54  ;;  %v475_v56 = vmul.f32 %v473_v48, %v450_v54 }
  0x96   : > { %v444_v57 = vadd.f32 %v440_v50, %v410_v52  ;;  %v445_v58 = vadd.f32 %v441_v51, %v411_v53 }
  0x97   : > { %v375_v59 = vpop.permute.xlu0 %374 }
  0x98   : > { %v478_v60 = vadd.f32 %v474_v55, %v444_v57  ;;  %v479_v61 = vadd.f32 %v475_v56, %v445_v58  ;;  %v398_v62 = vmul.f32 %v391_v37, %v375_v59  ;;  %v399_v63 = vmul.f32 %v395_v38, %v375_v59 }
  0x99   : > { %v408_v0 = vpop.permute.xlu1 %407 }
  0x9a   : > { %2010 = vtanh.f32 %v478_v60  ;;  %v412_v3 = vadd.f32 %v408_v0, %v398_v62  ;;  %v413_v5 = vadd.f32 %v408_v0, %v399_v63 }
  0x9b   : > { %2012 = vtanh.f32 %v479_v61 }
  0x9c   : > { %v420_v2 = vpop.permute.xlu0 %419 }
  0x9d   : > { %v442_v6 = vmul.f32 %v435_v43, %v420_v2  ;;  %v443_v7 = vmul.f32 %v439_v44, %v420_v2 }
  0x9e   : > { %v454_v8 = vpop.permute.xlu1 %453 }
  0x9f   : > { %v446_v9 = vadd.f32 %v442_v6, %v412_v3  ;;  %v447_v10 = vadd.f32 %v443_v7, %v413_v5  ;;  %v476_v11 = vmul.f32 %v469_v47, %v454_v8  ;;  %v477_v12 = vmul.f32 %v473_v48, %v454_v8 }
  0xa0   : > { %v2375_v7 = vsub.s32 7, %v2319_v25 }
  0xa1   : > { %v480_v13 = vadd.f32 %v476_v11, %v446_v9  ;;  %v481_v14 = vadd.f32 %v477_v12, %v447_v10  ;;  %v518_v45 = vpop.permute.xlu0 %517 }
  0xa3   : > { %2014 = vtanh.f32 %v480_v13  ;;  %v503_v15 = vpop.permute.xlu1 %502 }
  0xa4   : > { %v2011_v16 = vpop.eup %2010  ;;  %2016 = vtanh.f32 %v481_v14 }
  0xa5   : > { %v2013_v17 = vpop.eup %2012  ;;  %v486_v18 = vmul.f32 0.25, %v2011_v16 }
  0xa6   : > { %v487_v19 = vmul.f32 0.25, %v2013_v17  ;;  %v556_v62 = vpop.permute.xlu0 %555 }
  0xa7   : > { %v490_v20 = vadd.f32 0.25, %v486_v18 }
  0xa8   : > { %v491_v21 = vadd.f32 0.25, %v487_v19  ;;  %v524_v22 = vpop.permute.xlu1 %523 }
  0xa9   : > { %2018 = vtanh.f32 %v490_v20 }
  0xaa   : > { %2020 = vtanh.f32 %v491_v21 }
  0xab   : > { %v604_v19 = vpop.permute.xlu0 %603 }
  0xad   : > { %v2015_v23 = vpop.eup %2014  ;;  %v540_v24 = vpop.permute.xlu1 %539 }
  0xae   : > { %v2017_v28 = vpop.eup %2016  ;;  %v488_v31 = vmul.f32 0.25, %v2015_v23 }
  0xaf   : > { %v489_v32 = vmul.f32 0.25, %v2017_v28 }
  0xb0   : > { %v492_v37 = vadd.f32 0.25, %v488_v31 }
  0xb1   : > { %v493_v39 = vadd.f32 0.25, %v489_v32 }
  0xb2   : > { %v572_v35 = vpop.permute.xlu1 %571  ;;  %2022 = vtanh.f32 %v492_v37 }
  0xb3   : > { %v2019_v36 = vpop.eup %2018  ;;  %2024 = vtanh.f32 %v493_v39 }
  0xb4   : > { %v2354_v38 = vpop.eup %2020  ;;  %v508_v40 = vrot.slane %v2019_v36, %v2325_v26  ;;  %v529_v41 = vrot.slane %v2019_v36, %v2331_v29  ;;  %v545_v47 = vrot.slane %v2019_v36, %v2339_v33  ;;  %v561_v53 = vrot.slane %v2019_v36, %v2359_v42 }
  0xb5   : > { %v512_v43 = vrot.slane %v2354_v38, %v2325_v26  ;;  %v533_v44 = vrot.slane %v2354_v38, %v2331_v29  ;;  %v549_v49 = vrot.slane %v2354_v38, %v2339_v33  ;;  %v565_v56 = vrot.slane %v2354_v38, %v2359_v42 }
  0xb6   : > { %v513_v46 = vmul.f32 %v508_v40, %v503_v15  ;;  %v534_v51 = vmul.f32 %v529_v41, %v524_v22  ;;  %v550_v58 = vmul.f32 %v545_v47, %v540_v24  ;;  %v577_v59 = vrot.slane %v2019_v36, %v2328_v27 }
  0xb7   : > { %v514_v48 = vmul.f32 %v512_v43, %v503_v15  ;;  %v588_v50 = vpop.permute.xlu1 %587  ;;  %v535_v54 = vmul.f32 %v533_v44, %v524_v22  ;;  %v551_v61 = vmul.f32 %v549_v49, %v540_v24  ;;  %v581_v63 = vrot.slane %v2354_v38, %v2328_v27 }
  0xb8   : > { %v520_v52 = vadd.f32 %v518_v45, %v513_v46  ;;  %v566_v2 = vmul.f32 %v561_v53, %v556_v62  ;;  %v567_v6 = vmul.f32 %v565_v56, %v556_v62  ;;  %v582_v9 = vmul.f32 %v577_v59, %v572_v35 }
  0xb9   : > { %v521_v55 = vadd.f32 %v518_v45, %v514_v48  ;;  %v609_v10 = vrot.slane %v2019_v36, %v2342_v34  ;;  %v593_v11 = vrot.slane %v2019_v36, %v2334_v30  ;;  %v583_v13 = vmul.f32 %v581_v63, %v572_v35 }
  0xba   : > { %v536_v57 = vadd.f32 %v534_v51, %v520_v52  ;;  %v613_v14 = vrot.slane %v2354_v38, %v2342_v34  ;;  %v597_v15 = vrot.slane %v2354_v38, %v2334_v30  ;;  %v625_v28 = vrot.slane %v2019_v36, %v2375_v7 }
  0xbb   : > { %v537_v60 = vadd.f32 %v535_v54, %v521_v55  ;;  %v598_v17 = vmul.f32 %v593_v11, %v588_v50  ;;  %v614_v23 = vmul.f32 %v609_v10, %v604_v19  ;;  %v629_v35 = vrot.slane %v2354_v38, %v2375_v7  ;;  %v652_v38 = vpop.permute.xlu0 %651 }
  0xbc   : > { %v552_v0 = vadd.f32 %v550_v58, %v536_v57  ;;  %v620_v3 = vpop.permute.xlu1 %619  ;;  %v2383_v18 = vpop.eup %2022  ;;  %v599_v20 = vmul.f32 %v597_v15, %v588_v50  ;;  %v615_v31 = vmul.f32 %v613_v14, %v604_v19 }
  0xbd   : > { %v553_v5 = vadd.f32 %v551_v61, %v537_v60  ;;  %v2385_v22 = vpop.eup %2024  ;;  %v657_v37 = vrot.slane %v2383_v18, %v2331_v29  ;;  %v630_v40 = vmul.f32 %v625_v28, %v620_v3  ;;  %v641_v41 = vrot.slane %v2383_v18, %v2325_v26 }
  0xbe   : > { %v568_v8 = vadd.f32 %v566_v2, %v552_v0  ;;  %v661_v43 = vrot.slane %v2385_v22, %v2331_v29  ;;  %v631_v45 = vmul.f32 %v629_v35, %v620_v3  ;;  %v645_v36 = vrot.slane %v2385_v22, %v2325_v26 }
  0xbf   : > { %v569_v12 = vadd.f32 %v567_v6, %v553_v5  ;;  %v662_v51 = vmul.f32 %v657_v37, %v652_v38  ;;  %v673_v53 = vrot.slane %v2383_v18, %v2339_v33  ;;  %v677_v56 = vrot.slane %v2385_v22, %v2339_v33  ;;  %v700_v10 = vpop.permute.xlu0 %699 }
  0xc0   : > { %v584_v16 = vadd.f32 %v582_v9, %v568_v8  ;;  %v663_v54 = vmul.f32 %v661_v43, %v652_v38  ;;  %v689_v59 = vrot.slane %v2383_v18, %v2359_v42  ;;  %v693_v60 = vrot.slane %v2385_v22, %v2359_v42 }
  0xc1   : > { %v585_v25 = vadd.f32 %v583_v13, %v569_v12  ;;  %v636_v21 = vpop.permute.xlu1 %635  ;;  %v705_v61 = vrot.slane %v2383_v18, %v2328_v27  ;;  %v709_v2 = vrot.slane %v2385_v22, %v2328_v27  ;;  %v721_v15 = vrot.slane %v2383_v18, %v2334_v30 }
  0xc2   : > { %v600_v24 = vadd.f32 %v598_v17, %v584_v16  ;;  %v646_v47 = vmul.f32 %v641_v41, %v636_v21  ;;  %v647_v50 = vmul.f32 %v645_v36, %v636_v21  ;;  %v725_v16 = vrot.slane %v2385_v22, %v2334_v30 }
  0xc3   : > { %v601_v32 = vadd.f32 %v599_v20, %v585_v25  ;;  %v710_v12 = vmul.f32 %v705_v61, %v700_v10  ;;  %v711_v13 = vmul.f32 %v709_v2, %v700_v10  ;;  %v753_v21 = vrot.slane %v2383_v18, %v2375_v7 }
  0xc4   : > { %v616_v39 = vadd.f32 %v614_v23, %v600_v24  ;;  %v757_v23 = vrot.slane %v2385_v22, %v2375_v7  ;;  %v737_v24 = vrot.slane %v2383_v18, %v2342_v34  ;;  %v741_v28 = vrot.slane %v2385_v22, %v2342_v34 }
  0xc5   : > { %v617_v44 = vadd.f32 %v615_v31, %v601_v32  ;;  %v748_v31 = vpop.permute.xlu0 %747 }
  0xc6   : > { %v632_v46 = vadd.f32 %v630_v40, %v616_v39  ;;  %v668_v48 = vpop.permute.xlu1 %667  ;;  %v758_v41 = vmul.f32 %v753_v21, %v748_v31  ;;  %v759_v43 = vmul.f32 %v757_v23, %v748_v31 }
  0xc7   : > { %v633_v49 = vadd.f32 %v631_v45, %v617_v44  ;;  %v678_v58 = vmul.f32 %v673_v53, %v668_v48  ;;  %v679_v63 = vmul.f32 %v677_v56, %v668_v48 }
  0xc8   : > { %v648_v52 = vadd.f32 %v646_v47, %v632_v46 }
  0xc9   : > { %v649_v55 = vadd.f32 %v647_v50, %v633_v49 }
  0xca   : > { %v664_v57 = vadd.f32 %v662_v51, %v648_v52  ;;  %v2431_v52 = vpop.permute.xlu0 %789 }
  0xcb   : > { %v665_v62 = vadd.f32 %v663_v54, %v649_v55  ;;  %v684_v0 = vpop.permute.xlu1 %683 }
  0xcc   : > { %v680_v3 = vadd.f32 %v678_v58, %v664_v57  ;;  %v694_v5 = vmul.f32 %v689_v59, %v684_v0  ;;  %v695_v6 = vmul.f32 %v693_v60, %v684_v0 }
  0xcd   : > { %v681_v8 = vadd.f32 %v679_v63, %v665_v62 }
  0xce   : > { %v696_v9 = vadd.f32 %v694_v5, %v680_v3 }
  0xcf   : > { %v697_v11 = vadd.f32 %v695_v6, %v681_v8  ;;  %v1686_v8 = vld [vmem:[%s2830_s7] sm:$0xff] }
  0xd0   : > { %v716_v14 = vpop.permute.xlu1 %715  ;;  %v712_v17 = vadd.f32 %v710_v12, %v696_v9  ;;  %1692 = vperm.xlu1 %2004, %v1686_v8  }
  0xd1   : > { %v713_v25 = vadd.f32 %v711_v13, %v697_v11  ;;  %v726_v19 = vmul.f32 %v721_v15, %v716_v14  ;;  %v727_v20 = vmul.f32 %v725_v16, %v716_v14  ;;  %v2454_v11 = vpop.permute.xlu0 %837 }
  0xd3   : > { %v728_v35 = vadd.f32 %v726_v19, %v712_v17  ;;  %v729_v37 = vadd.f32 %v727_v20, %v713_v25  ;;  %v1687_v20 = vld [vmem:[%s2830_s7 + $0x8] sm:$0xff] }
  0xd4   : > { %1697 = vperm.xlu1 %2004, %v1687_v20  }
  0xd5   : > { %v732_v32 = vpop.permute.xlu1 %731 }
  0xd6   : > { %v742_v39 = vmul.f32 %v737_v24, %v732_v32  ;;  %v743_v40 = vmul.f32 %v741_v28, %v732_v32 }
  0xd8   : > { %v744_v44 = vadd.f32 %v742_v39, %v728_v35  ;;  %v745_v45 = vadd.f32 %v743_v40, %v729_v37  ;;  %v2471_v39 = vpop.permute.xlu0 %885 }
  0xda   : > { %v760_v36 = vadd.f32 %v758_v41, %v744_v44  ;;  %v761_v46 = vadd.f32 %v759_v43, %v745_v45  ;;  %v2422_v47 = vpop.permute.xlu1 %768 }
  0xdc   : > { %2026 = vtanh.f32 %v760_v36 }
  0xdd   : > { %2028 = vtanh.f32 %v761_v46  ;;  %v1689_v46 = vld [vmem:[%s2831_s8 + $0x8] sm:$0xff] }
  0xde   : > { %v2424_v18 = vpop.permute.xlu1 %783  ;;  %1719 = vperm.xlu1 %2004, %v1689_v46  }
  0xe2   : > { %2006 = vset.pattern.permute.xlu1 %v2154_v1 }
  0xe3   : > { %v2426_v48 = vpop.permute.xlu1 %805  ;;  %1727 = vperm.xlu1 %2006, %v1686_v8  }
  0xe6   : > { %v2027_v22 = vpop.eup %2026 }
  0xe7   : > { %v2029_v38 = vpop.eup %2028  ;;  %v774_v49 = vrot.slane %v2027_v22, %v2325_v26  ;;  %v795_v50 = vrot.slane %v2027_v22, %v2331_v29  ;;  %v811_v56 = vrot.slane %v2027_v22, %v2339_v33  ;;  %v827_v61 = vrot.slane %v2027_v22, %v2359_v42  ;;  %2008 = vset.pattern.permute.xlu1 %v2156_v4 }
  0xe8   : > { %v778_v51 = vrot.slane %v2029_v38, %v2325_v26  ;;  %v799_v53 = vrot.slane %v2029_v38, %v2331_v29  ;;  %v2434_v54 = vpop.permute.xlu1 %821  ;;  %v815_v58 = vrot.slane %v2029_v38, %v2339_v33  ;;  %v831_v0 = vrot.slane %v2029_v38, %v2359_v42  ;;  %1751 = vperm.xlu1 %2008, %v1686_v8  }
  0xe9   : > { %v779_v55 = vmul.f32 %v774_v49, %v2422_v47  ;;  %v800_v60 = vmul.f32 %v795_v50, %v2431_v52  ;;  %v816_v3 = vmul.f32 %v811_v56, %v2426_v48  ;;  %v843_v5 = vrot.slane %v2027_v22, %v2328_v27 }
  0xea   : > { %v780_v57 = vmul.f32 %v778_v51, %v2422_v47  ;;  %v801_v63 = vmul.f32 %v799_v53, %v2431_v52  ;;  %v817_v10 = vmul.f32 %v815_v58, %v2426_v48  ;;  %v847_v12 = vrot.slane %v2029_v38, %v2328_v27 }
  0xeb   : > { %v786_v59 = vadd.f32 %v2424_v18, %v779_v55  ;;  %v832_v14 = vmul.f32 %v827_v61, %v2434_v54  ;;  %v833_v16 = vmul.f32 %v831_v0, %v2434_v54  ;;  %v848_v17 = vmul.f32 %v843_v5, %v2454_v11 }
  0xec   : > { %v787_v62 = vadd.f32 %v2424_v18, %v780_v57  ;;  %v859_v19 = vrot.slane %v2027_v22, %v2334_v30  ;;  %v849_v21 = vmul.f32 %v847_v12, %v2454_v11  ;;  %v863_v24 = vrot.slane %v2029_v38, %v2334_v30  ;;  %1755 = vperm.xlu1 %2008, %v1687_v20  }
  0xed   : > { %v802_v2 = vadd.f32 %v800_v60, %v786_v59  ;;  %v2448_v6 = vpop.permute.xlu1 %853  ;;  %v891_v31 = vrot.slane %v2027_v22, %v2375_v7  ;;  %v875_v37 = vrot.slane %v2027_v22, %v2342_v34  ;;  %v895_v40 = vrot.slane %v2029_v38, %v2375_v7 }
  0xee   : > { %v803_v9 = vadd.f32 %v801_v63, %v787_v62  ;;  %v864_v35 = vmul.f32 %v859_v19, %v2448_v6  ;;  %v865_v43 = vmul.f32 %v863_v24, %v2448_v6  ;;  %v879_v44 = vrot.slane %v2029_v38, %v2342_v34  ;;  %v1688_v38 = vld [vmem:[%s2831_s8] sm:$0xff] }
  0xef   : > { %v818_v13 = vadd.f32 %v816_v3, %v802_v2  ;;  %v896_v22 = vmul.f32 %v891_v31, %v2471_v39  ;;  %v897_v53 = vmul.f32 %v895_v40, %v2471_v39  ;;  %1714 = vperm.xlu0 %2005, %v1688_v38  }
  0xf0   : > { %v819_v15 = vadd.f32 %v817_v10, %v803_v9 }
  0xf1   : > { %v834_v25 = vadd.f32 %v832_v14, %v818_v13 }
  0xf2   : > { %v835_v23 = vadd.f32 %v833_v16, %v819_v15  ;;  %v2466_v28 = vpop.permute.xlu1 %869 }
  0xf3   : > { %v850_v32 = vadd.f32 %v848_v17, %v834_v25  ;;  %v880_v36 = vmul.f32 %v875_v37, %v2466_v28  ;;  %v881_v50 = vmul.f32 %v879_v44, %v2466_v28  ;;  %2007 = vset.pattern.permute.xlu0 %v2154_v1 }
  0xf4   : > { %v851_v41 = vadd.f32 %v849_v21, %v835_v23  ;;  %1731 = vperm.xlu0 %2007, %v1687_v20  }
  0xf5   : > { %v866_v45 = vadd.f32 %v864_v35, %v850_v32 }
  0xf6   : > { %v867_v49 = vadd.f32 %v865_v43, %v851_v41 }
  0xf7   : > { %v882_v51 = vadd.f32 %v880_v36, %v866_v45 }
  0xf8   : > { %v883_v55 = vadd.f32 %v881_v50, %v867_v49  ;;  %2009 = vset.pattern.permute.xlu0 %v2156_v4 }
  0xf9   : > { %v898_v56 = vadd.f32 %v896_v22, %v882_v51 }
  0xfa   : > { %v899_v57 = vadd.f32 %v897_v53, %v883_v55 }
  0xfb   : > { %2030 = vtanh.f32 %v898_v56 }
  0xfc   : > { %2032 = vtanh.f32 %v899_v57 }
 0x105   : > { %v2031_v58 = vpop.eup %2030 }
 0x106   : > { %v2033_v59 = vpop.eup %2032  ;;  %v905_v60 = vrot.slane %v2031_v58, %v2325_v26  ;;  %v917_v61 = vrot.slane %v2031_v58, %v2331_v29  ;;  %v929_v2 = vrot.slane %v2031_v58, %v2339_v33  ;;  %v941_v10 = vrot.slane %v2031_v58, %v2359_v42 }
 0x107   : > { %v909_v62 = vrot.slane %v2033_v59, %v2325_v26  ;;  %v921_v63 = vrot.slane %v2033_v59, %v2331_v29  ;;  %v933_v5 = vrot.slane %v2033_v59, %v2339_v33  ;;  %v945_v1 = vrot.slane %v2033_v59, %v2359_v42 }
 0x108   : > { %v910_v0 = vmul.f32 %v905_v60, %v2422_v47  ;;  %v922_v9 = vmul.f32 %v917_v61, %v2431_v52  ;;  %v934_v15 = vmul.f32 %v929_v2, %v2426_v48  ;;  %v953_v16 = vrot.slane %v2031_v58, %v2328_v27 }
 0x109   : > { %v911_v3 = vmul.f32 %v909_v62, %v2422_v47  ;;  %v923_v13 = vmul.f32 %v921_v63, %v2431_v52  ;;  %v935_v25 = vmul.f32 %v933_v5, %v2426_v48  ;;  %v957_v19 = vrot.slane %v2033_v59, %v2328_v27 }
 0x10a   : > { %v912_v8 = vadd.f32 %v910_v0, %v2424_v18  ;;  %v946_v21 = vmul.f32 %v941_v10, %v2434_v54  ;;  %v965_v23 = vrot.slane %v2031_v58, %v2334_v30  ;;  %v947_v31 = vmul.f32 %v945_v1, %v2434_v54 }
 0x10b   : > { %v913_v12 = vadd.f32 %v911_v3, %v2424_v18  ;;  %v969_v32 = vrot.slane %v2033_v59, %v2334_v30  ;;  %v958_v37 = vmul.f32 %v953_v16, %v2454_v11  ;;  %v977_v4 = vrot.slane %v2031_v58, %v2342_v34 }
 0x10c   : > { %v924_v14 = vadd.f32 %v922_v9, %v912_v8  ;;  %v959_v41 = vmul.f32 %v957_v19, %v2454_v11  ;;  %v981_v43 = vrot.slane %v2033_v59, %v2342_v34  ;;  %v970_v45 = vmul.f32 %v965_v23, %v2448_v6 }
 0x10d   : > { %v925_v17 = vadd.f32 %v923_v13, %v913_v12  ;;  %v989_v36 = vrot.slane %v2031_v58, %v2375_v7  ;;  %v971_v49 = vmul.f32 %v969_v32, %v2448_v6  ;;  %v993_v50 = vrot.slane %v2033_v59, %v2375_v7 }
 0x10e   : > { %v936_v20 = vadd.f32 %v934_v15, %v924_v14  ;;  %v982_v51 = vmul.f32 %v977_v4, %v2466_v28  ;;  %v983_v55 = vmul.f32 %v981_v43, %v2466_v28 }
 0x10f   : > { %v937_v24 = vadd.f32 %v935_v25, %v925_v17  ;;  %v994_v57 = vmul.f32 %v989_v36, %v2471_v39  ;;  %v995_v60 = vmul.f32 %v993_v50, %v2471_v39 }
 0x110   : > { %v948_v35 = vadd.f32 %v946_v21, %v936_v20 }
 0x111   : > { %v949_v40 = vadd.f32 %v947_v31, %v937_v24 }
 0x112   : > { %v960_v44 = vadd.f32 %v958_v37, %v948_v35 }
 0x113   : > { %v961_v46 = vadd.f32 %v959_v41, %v949_v40 }
 0x114   : > { %v972_v22 = vadd.f32 %v970_v45, %v960_v44 }
 0x115   : > { %v973_v53 = vadd.f32 %v971_v49, %v961_v46 }
 0x116   : > { %v984_v56 = vadd.f32 %v982_v51, %v972_v22 }
 0x117   : > { %v985_v38 = vadd.f32 %v983_v55, %v973_v53 }
 0x118   : > { %v996_v61 = vadd.f32 %v994_v57, %v984_v56 }
 0x119   : > { %v997_v62 = vadd.f32 %v995_v60, %v985_v38 }
 0x11a   : > { %2034 = vtanh.f32 %v996_v61 }
 0x11b   : > { %2036 = vtanh.f32 %v997_v62 }
 0x124   : > { %v2035_v58 = vpop.eup %2034 }
 0x125   : > { %v2037_v63 = vpop.eup %2036  ;;  %v1003_v59 = vrot.slane %v2035_v58, %v2325_v26  ;;  %v1015_v0 = vrot.slane %v2035_v58, %v2331_v29  ;;  %v1027_v8 = vrot.slane %v2035_v58, %v2339_v33  ;;  %v1039_v1 = vrot.slane %v2035_v58, %v2359_v42 }
 0x126   : > { %v1007_v2 = vrot.slane %v2037_v63, %v2325_v26  ;;  %v1019_v3 = vrot.slane %v2037_v63, %v2331_v29  ;;  %v1031_v10 = vrot.slane %v2037_v63, %v2339_v33  ;;  %v1043_v16 = vrot.slane %v2037_v63, %v2359_v42 }
 0x127   : > { %v1008_v5 = vmul.f32 %v1003_v59, %v2422_v47  ;;  %v1020_v13 = vmul.f32 %v1015_v0, %v2431_v52  ;;  %v1032_v25 = vmul.f32 %v1027_v8, %v2426_v48  ;;  %v1051_v19 = vrot.slane %v2035_v58, %v2328_v27 }
 0x128   : > { %v1009_v9 = vmul.f32 %v1007_v2, %v2422_v47  ;;  %v1021_v15 = vmul.f32 %v1019_v3, %v2431_v52  ;;  %v1033_v21 = vmul.f32 %v1031_v10, %v2426_v48  ;;  %v1055_v23 = vrot.slane %v2037_v63, %v2328_v27 }
 0x129   : > { %v1010_v12 = vadd.f32 %v1008_v5, %v2424_v18  ;;  %v1044_v31 = vmul.f32 %v1039_v1, %v2434_v54  ;;  %v1063_v32 = vrot.slane %v2035_v58, %v2334_v30  ;;  %v1045_v37 = vmul.f32 %v1043_v16, %v2434_v54 }
 0x12a   : > { %v1011_v14 = vadd.f32 %v1009_v9, %v2424_v18  ;;  %v1067_v4 = vrot.slane %v2037_v63, %v2334_v30  ;;  %v1056_v41 = vmul.f32 %v1051_v19, %v2454_v11  ;;  %v1075_v43 = vrot.slane %v2035_v58, %v2342_v34 }
 0x12b   : > { %v1022_v17 = vadd.f32 %v1020_v13, %v1010_v12  ;;  %v1057_v45 = vmul.f32 %v1055_v23, %v2454_v11  ;;  %v1079_v36 = vrot.slane %v2037_v63, %v2342_v34  ;;  %v1068_v49 = vmul.f32 %v1063_v32, %v2448_v6 }
 0x12c   : > { %v1023_v20 = vadd.f32 %v1021_v15, %v1011_v14  ;;  %v1087_v50 = vrot.slane %v2035_v58, %v2375_v7  ;;  %v1069_v51 = vmul.f32 %v1067_v4, %v2448_v6  ;;  %v1091_v53 = vrot.slane %v2037_v63, %v2375_v7 }
 0x12d   : > { %v1034_v24 = vadd.f32 %v1032_v25, %v1022_v17  ;;  %v1080_v56 = vmul.f32 %v1075_v43, %v2466_v28  ;;  %v1081_v38 = vmul.f32 %v1079_v36, %v2466_v28 }
 0x12e   : > { %v1035_v35 = vadd.f32 %v1033_v21, %v1023_v20  ;;  %v1092_v61 = vmul.f32 %v1087_v50, %v2471_v39  ;;  %v1093_v59 = vmul.f32 %v1091_v53, %v2471_v39 }
 0x12f   : > { %v1046_v40 = vadd.f32 %v1044_v31, %v1034_v24 }
 0x130   : > { %v1047_v44 = vadd.f32 %v1045_v37, %v1035_v35 }
 0x131   : > { %v1058_v46 = vadd.f32 %v1056_v41, %v1046_v40 }
 0x132   : > { %v1059_v22 = vadd.f32 %v1057_v45, %v1047_v44 }
 0x133   : > { %v1070_v55 = vadd.f32 %v1068_v49, %v1058_v46 }
 0x134   : > { %v1071_v57 = vadd.f32 %v1069_v51, %v1059_v22 }
 0x135   : > { %v1082_v60 = vadd.f32 %v1080_v56, %v1070_v55 }
 0x136   : > { %v1083_v62 = vadd.f32 %v1081_v38, %v1071_v57 }
 0x137   : > { %v1094_v0 = vadd.f32 %v1092_v61, %v1082_v60 }
 0x138   : > { %v1095_v2 = vadd.f32 %v1093_v59, %v1083_v62 }
 0x139   : > { %2038 = vtanh.f32 %v1094_v0 }
 0x13a   : > { %2040 = vtanh.f32 %v1095_v2 }
 0x143   : > { %v2039_v58 = vpop.eup %2038 }
 0x144   : > { %v2041_v3 = vpop.eup %2040  ;;  %v1101_v63 = vrot.slane %v2039_v58, %v2325_v26  ;;  %v1113_v5 = vrot.slane %v2039_v58, %v2331_v29  ;;  %v1125_v12 = vrot.slane %v2039_v58, %v2339_v33  ;;  %v1137_v16 = vrot.slane %v2039_v58, %v2359_v42 }
 0x145   : > { %v1105_v8 = vrot.slane %v2041_v3, %v2325_v26  ;;  %v1117_v9 = vrot.slane %v2041_v3, %v2331_v29  ;;  %v1129_v1 = vrot.slane %v2041_v3, %v2339_v33  ;;  %v1141_v19 = vrot.slane %v2041_v3, %v2359_v42 }
 0x146   : > { %v1106_v10 = vmul.f32 %v1101_v63, %v2422_v47  ;;  %v1118_v15 = vmul.f32 %v1113_v5, %v2431_v52  ;;  %v1130_v21 = vmul.f32 %v1125_v12, %v2426_v48  ;;  %v1149_v23 = vrot.slane %v2039_v58, %v2328_v27 }
 0x147   : > { %v1107_v13 = vmul.f32 %v1105_v8, %v2422_v47  ;;  %v1119_v25 = vmul.f32 %v1117_v9, %v2431_v52  ;;  %v1131_v31 = vmul.f32 %v1129_v1, %v2426_v48  ;;  %v1153_v32 = vrot.slane %v2041_v3, %v2328_v27 }
 0x148   : > { %v1108_v14 = vadd.f32 %v1106_v10, %v2424_v18  ;;  %v1142_v37 = vmul.f32 %v1137_v16, %v2434_v54  ;;  %v1161_v4 = vrot.slane %v2039_v58, %v2334_v30  ;;  %v1143_v41 = vmul.f32 %v1141_v19, %v2434_v54 }
 0x149   : > { %v1109_v17 = vadd.f32 %v1107_v13, %v2424_v18  ;;  %v1165_v43 = vrot.slane %v2041_v3, %v2334_v30  ;;  %v1154_v45 = vmul.f32 %v1149_v23, %v2454_v11  ;;  %v1173_v36 = vrot.slane %v2039_v58, %v2342_v34 }
 0x14a   : > { %v1120_v20 = vadd.f32 %v1118_v15, %v1108_v14  ;;  %v1155_v49 = vmul.f32 %v1153_v32, %v2454_v11  ;;  %v1177_v50 = vrot.slane %v2041_v3, %v2342_v34  ;;  %v1166_v51 = vmul.f32 %v1161_v4, %v2448_v6 }
 0x14b   : > { %v1121_v24 = vadd.f32 %v1119_v25, %v1109_v17  ;;  %v1185_v53 = vrot.slane %v2039_v58, %v2375_v7  ;;  %v1167_v56 = vmul.f32 %v1165_v43, %v2448_v6  ;;  %v1189_v57 = vrot.slane %v2041_v3, %v2375_v7 }
 0x14c   : > { %v1132_v35 = vadd.f32 %v1130_v21, %v1120_v20  ;;  %v1178_v60 = vmul.f32 %v1173_v36, %v2466_v28  ;;  %v1179_v62 = vmul.f32 %v1177_v50, %v2466_v28 }
 0x14d   : > { %v1133_v40 = vadd.f32 %v1131_v31, %v1121_v24  ;;  %v1190_v0 = vmul.f32 %v1185_v53, %v2471_v39  ;;  %v1191_v63 = vmul.f32 %v1189_v57, %v2471_v39 }
 0x14e   : > { %v1144_v44 = vadd.f32 %v1142_v37, %v1132_v35 }
 0x14f   : > { %v1145_v46 = vadd.f32 %v1143_v41, %v1133_v40 }
 0x150   : > { %v1156_v22 = vadd.f32 %v1154_v45, %v1144_v44 }
 0x151   : > { %v1157_v55 = vadd.f32 %v1155_v49, %v1145_v46 }
 0x152   : > { %v1168_v38 = vadd.f32 %v1166_v51, %v1156_v22 }
 0x153   : > { %v1169_v61 = vadd.f32 %v1167_v56, %v1157_v55 }
 0x154   : > { %v1180_v59 = vadd.f32 %v1178_v60, %v1168_v38 }
 0x155   : > { %v1181_v2 = vadd.f32 %v1179_v62, %v1169_v61 }
 0x156   : > { %v1192_v5 = vadd.f32 %v1190_v0, %v1180_v59 }
 0x157   : > { %v1193_v8 = vadd.f32 %v1191_v63, %v1181_v2 }
 0x158   : > { %2042 = vtanh.f32 %v1192_v5 }
 0x159   : > { %2044 = vtanh.f32 %v1193_v8 }
 0x162   : > { %v2043_v58 = vpop.eup %2042 }
 0x163   : > { %v2045_v9 = vpop.eup %2044  ;;  %v1199_v3 = vrot.slane %v2043_v58, %v2325_v26  ;;  %v1211_v10 = vrot.slane %v2043_v58, %v2331_v29  ;;  %v1223_v14 = vrot.slane %v2043_v58, %v2339_v33  ;;  %v1235_v19 = vrot.slane %v2043_v58, %v2359_v42 }
 0x164   : > { %v1203_v12 = vrot.slane %v2045_v9, %v2325_v26  ;;  %v1215_v13 = vrot.slane %v2045_v9, %v2331_v29  ;;  %v1227_v16 = vrot.slane %v2045_v9, %v2339_v33  ;;  %v1239_v23 = vrot.slane %v2045_v9, %v2359_v42 }
 0x165   : > { %v1204_v1 = vmul.f32 %v1199_v3, %v2422_v47  ;;  %v1216_v25 = vmul.f32 %v1211_v10, %v2431_v52  ;;  %v1228_v31 = vmul.f32 %v1223_v14, %v2426_v48  ;;  %v1247_v32 = vrot.slane %v2043_v58, %v2328_v27 }
 0x166   : > { %v1205_v15 = vmul.f32 %v1203_v12, %v2422_v47  ;;  %v1217_v21 = vmul.f32 %v1215_v13, %v2431_v52  ;;  %v1229_v37 = vmul.f32 %v1227_v16, %v2426_v48  ;;  %v1251_v4 = vrot.slane %v2045_v9, %v2328_v27 }
 0x167   : > { %v1206_v17 = vadd.f32 %v1204_v1, %v2424_v18  ;;  %v1240_v41 = vmul.f32 %v1235_v19, %v2434_v54  ;;  %v1259_v43 = vrot.slane %v2043_v58, %v2334_v30  ;;  %v1241_v45 = vmul.f32 %v1239_v23, %v2434_v54 }
 0x168   : > { %v1207_v20 = vadd.f32 %v1205_v15, %v2424_v18  ;;  %v1263_v36 = vrot.slane %v2045_v9, %v2334_v30  ;;  %v1252_v49 = vmul.f32 %v1247_v32, %v2454_v11  ;;  %v1271_v50 = vrot.slane %v2043_v58, %v2342_v34 }
 0x169   : > { %v1218_v24 = vadd.f32 %v1216_v25, %v1206_v17  ;;  %v1253_v51 = vmul.f32 %v1251_v4, %v2454_v11  ;;  %v1275_v53 = vrot.slane %v2045_v9, %v2342_v34  ;;  %v1264_v56 = vmul.f32 %v1259_v43, %v2448_v6 }
 0x16a   : > { %v1219_v35 = vadd.f32 %v1217_v21, %v1207_v20  ;;  %v1283_v57 = vrot.slane %v2043_v58, %v2375_v7  ;;  %v1265_v60 = vmul.f32 %v1263_v36, %v2448_v6  ;;  %v1287_v61 = vrot.slane %v2045_v9, %v2375_v7 }
 0x16b   : > { %v1230_v40 = vadd.f32 %v1228_v31, %v1218_v24  ;;  %v1276_v59 = vmul.f32 %v1271_v50, %v2466_v28  ;;  %v1277_v2 = vmul.f32 %v1275_v53, %v2466_v28 }
 0x16c   : > { %v1231_v44 = vadd.f32 %v1229_v37, %v1219_v35  ;;  %v1288_v5 = vmul.f32 %v1283_v57, %v2471_v39  ;;  %v1289_v3 = vmul.f32 %v1287_v61, %v2471_v39 }
 0x16d   : > { %v1242_v46 = vadd.f32 %v1240_v41, %v1230_v40 }
 0x16e   : > { %v1243_v22 = vadd.f32 %v1241_v45, %v1231_v44 }
 0x16f   : > { %v1254_v55 = vadd.f32 %v1252_v49, %v1242_v46 }
 0x170   : > { %v1255_v38 = vadd.f32 %v1253_v51, %v1243_v22 }
 0x171   : > { %v1266_v62 = vadd.f32 %v1264_v56, %v1254_v55 }
 0x172   : > { %v1267_v0 = vadd.f32 %v1265_v60, %v1255_v38 }
 0x173   : > { %v1278_v63 = vadd.f32 %v1276_v59, %v1266_v62 }
 0x174   : > { %v1279_v8 = vadd.f32 %v1277_v2, %v1267_v0 }
 0x175   : > { %v1290_v10 = vadd.f32 %v1288_v5, %v1278_v63 }
 0x176   : > { %v1291_v12 = vadd.f32 %v1289_v3, %v1279_v8 }
 0x177   : > { %2046 = vtanh.f32 %v1290_v10 }
 0x178   : > { %2048 = vtanh.f32 %v1291_v12 }
 0x181   : > { %v2047_v58 = vpop.eup %2046 }
 0x182   : > { %v2049_v13 = vpop.eup %2048  ;;  %v1297_v9 = vrot.slane %v2047_v58, %v2325_v26  ;;  %v1309_v1 = vrot.slane %v2047_v58, %v2331_v29  ;;  %v1321_v17 = vrot.slane %v2047_v58, %v2339_v33  ;;  %v1333_v23 = vrot.slane %v2047_v58, %v2359_v42 }
 0x183   : > { %v1301_v14 = vrot.slane %v2049_v13, %v2325_v26  ;;  %v1313_v15 = vrot.slane %v2049_v13, %v2331_v29  ;;  %v1325_v19 = vrot.slane %v2049_v13, %v2339_v33  ;;  %v1337_v32 = vrot.slane %v2049_v13, %v2359_v42 }
 0x184   : > { %v1302_v16 = vmul.f32 %v1297_v9, %v2422_v47  ;;  %v1314_v21 = vmul.f32 %v1309_v1, %v2431_v52  ;;  %v1326_v37 = vmul.f32 %v1321_v17, %v2426_v48  ;;  %v1345_v4 = vrot.slane %v2047_v58, %v2328_v27 }
 0x185   : > { %v1303_v25 = vmul.f32 %v1301_v14, %v2422_v47  ;;  %v1315_v31 = vmul.f32 %v1313_v15, %v2431_v52  ;;  %v1327_v41 = vmul.f32 %v1325_v19, %v2426_v48  ;;  %v1349_v43 = vrot.slane %v2049_v13, %v2328_v27 }
 0x186   : > { %v1304_v20 = vadd.f32 %v1302_v16, %v2424_v18  ;;  %v1338_v45 = vmul.f32 %v1333_v23, %v2434_v54  ;;  %v1357_v36 = vrot.slane %v2047_v58, %v2334_v30  ;;  %v1339_v49 = vmul.f32 %v1337_v32, %v2434_v54 }
 0x187   : > { %v1305_v24 = vadd.f32 %v1303_v25, %v2424_v18  ;;  %v1361_v50 = vrot.slane %v2049_v13, %v2334_v30  ;;  %v1350_v51 = vmul.f32 %v1345_v4, %v2454_v11  ;;  %v1369_v53 = vrot.slane %v2047_v58, %v2342_v34 }
 0x188   : > { %v1316_v35 = vadd.f32 %v1314_v21, %v1304_v20  ;;  %v1351_v56 = vmul.f32 %v1349_v43, %v2454_v11  ;;  %v1373_v57 = vrot.slane %v2049_v13, %v2342_v34  ;;  %v1362_v60 = vmul.f32 %v1357_v36, %v2448_v6 }
 0x189   : > { %v1317_v40 = vadd.f32 %v1315_v31, %v1305_v24  ;;  %v1381_v61 = vrot.slane %v2047_v58, %v2375_v7  ;;  %v1363_v59 = vmul.f32 %v1361_v50, %v2448_v6  ;;  %v1385_v0 = vrot.slane %v2049_v13, %v2375_v7 }
 0x18a   : > { %v1328_v44 = vadd.f32 %v1326_v37, %v1316_v35  ;;  %v1374_v63 = vmul.f32 %v1369_v53, %v2466_v28  ;;  %v1375_v8 = vmul.f32 %v1373_v57, %v2466_v28 }
 0x18b   : > { %v1329_v46 = vadd.f32 %v1327_v41, %v1317_v40  ;;  %v1386_v10 = vmul.f32 %v1381_v61, %v2471_v39  ;;  %v1387_v9 = vmul.f32 %v1385_v0, %v2471_v39 }
 0x18c   : > { %v1340_v22 = vadd.f32 %v1338_v45, %v1328_v44 }
 0x18d   : > { %v1341_v55 = vadd.f32 %v1339_v49, %v1329_v46 }
 0x18e   : > { %v1352_v38 = vadd.f32 %v1350_v51, %v1340_v22 }
 0x18f   : > { %v1353_v62 = vadd.f32 %v1351_v56, %v1341_v55 }
 0x190   : > { %v1364_v2 = vadd.f32 %v1362_v60, %v1352_v38 }
 0x191   : > { %v1365_v5 = vadd.f32 %v1363_v59, %v1353_v62 }
 0x192   : > { %v1376_v3 = vadd.f32 %v1374_v63, %v1364_v2 }
 0x193   : > { %v1377_v12 = vadd.f32 %v1375_v8, %v1365_v5 }
 0x194   : > { %v1388_v1 = vadd.f32 %v1386_v10, %v1376_v3 }
 0x195   : > { %v1389_v14 = vadd.f32 %v1387_v9, %v1377_v12 }
 0x196   : > { %2050 = vtanh.f32 %v1388_v1 }
 0x197   : > { %2052 = vtanh.f32 %v1389_v14 }
 0x1a0   : > { %v2051_v58 = vpop.eup %2050 }
 0x1a1   : > { %v2053_v15 = vpop.eup %2052  ;;  %v1395_v13 = vrot.slane %v2051_v58, %v2325_v26  ;;  %v1407_v16 = vrot.slane %v2051_v58, %v2331_v29  ;;  %v1419_v20 = vrot.slane %v2051_v58, %v2339_v33  ;;  %v1431_v32 = vrot.slane %v2051_v58, %v2359_v42 }
 0x1a2   : > { %v1399_v17 = vrot.slane %v2053_v15, %v2325_v26  ;;  %v1411_v25 = vrot.slane %v2053_v15, %v2331_v29  ;;  %v1423_v23 = vrot.slane %v2053_v15, %v2339_v33  ;;  %v1435_v4 = vrot.slane %v2053_v15, %v2359_v42 }
 0x1a3   : > { %v1400_v19 = vmul.f32 %v1395_v13, %v2422_v47  ;;  %v1412_v31 = vmul.f32 %v1407_v16, %v2431_v52  ;;  %v1424_v41 = vmul.f32 %v1419_v20, %v2426_v48  ;;  %v1443_v43 = vrot.slane %v2051_v58, %v2328_v27 }
 0x1a4   : > { %v1401_v21 = vmul.f32 %v1399_v17, %v2422_v47  ;;  %v1413_v37 = vmul.f32 %v1411_v25, %v2431_v52  ;;  %v1425_v45 = vmul.f32 %v1423_v23, %v2426_v48  ;;  %v1447_v36 = vrot.slane %v2053_v15, %v2328_v27 }
 0x1a5   : > { %v1402_v24 = vadd.f32 %v1400_v19, %v2424_v18  ;;  %v1436_v49 = vmul.f32 %v1431_v32, %v2434_v54  ;;  %v1455_v50 = vrot.slane %v2051_v58, %v2334_v30  ;;  %v1437_v51 = vmul.f32 %v1435_v4, %v2434_v54 }
 0x1a6   : > { %v1403_v35 = vadd.f32 %v1401_v21, %v2424_v18  ;;  %v1459_v53 = vrot.slane %v2053_v15, %v2334_v30  ;;  %v1448_v56 = vmul.f32 %v1443_v43, %v2454_v11  ;;  %v1467_v57 = vrot.slane %v2051_v58, %v2342_v34 }
 0x1a7   : > { %v1414_v40 = vadd.f32 %v1412_v31, %v1402_v24  ;;  %v1449_v60 = vmul.f32 %v1447_v36, %v2454_v11  ;;  %v1471_v61 = vrot.slane %v2053_v15, %v2342_v34  ;;  %v1460_v59 = vmul.f32 %v1455_v50, %v2448_v6 }
 0x1a8   : > { %v1415_v44 = vadd.f32 %v1413_v37, %v1403_v35  ;;  %v1479_v0 = vrot.slane %v2051_v58, %v2375_v7  ;;  %v1461_v63 = vmul.f32 %v1459_v53, %v2448_v6  ;;  %v1483_v5 = vrot.slane %v2053_v15, %v2375_v7 }
 0x1a9   : > { %v1426_v46 = vadd.f32 %v1424_v41, %v1414_v40  ;;  %v1472_v3 = vmul.f32 %v1467_v57, %v2466_v28  ;;  %v1473_v12 = vmul.f32 %v1471_v61, %v2466_v28 }
 0x1aa   : > { %v1427_v22 = vadd.f32 %v1425_v45, %v1415_v44  ;;  %v1484_v1 = vmul.f32 %v1479_v0, %v2471_v39  ;;  %v1485_v13 = vmul.f32 %v1483_v5, %v2471_v39 }
 0x1ab   : > { %v1438_v55 = vadd.f32 %v1436_v49, %v1426_v46 }
 0x1ac   : > { %v1439_v38 = vadd.f32 %v1437_v51, %v1427_v22 }
 0x1ad   : > { %v1450_v62 = vadd.f32 %v1448_v56, %v1438_v55 }
 0x1ae   : > { %v1451_v2 = vadd.f32 %v1449_v60, %v1439_v38 }
 0x1af   : > { %v1462_v8 = vadd.f32 %v1460_v59, %v1450_v62 }
 0x1b0   : > { %v1463_v10 = vadd.f32 %v1461_v63, %v1451_v2 }
 0x1b1   : > { %v1474_v9 = vadd.f32 %v1472_v3, %v1462_v8 }
 0x1b2   : > { %v1475_v14 = vadd.f32 %v1473_v12, %v1463_v10 }
 0x1b3   : > { %v1486_v16 = vadd.f32 %v1484_v1, %v1474_v9 }
 0x1b4   : > { %v1487_v17 = vadd.f32 %v1485_v13, %v1475_v14 }
 0x1b5   : > { %2054 = vtanh.f32 %v1486_v16 }
 0x1b6   : > { %2056 = vtanh.f32 %v1487_v17 }
 0x1bf   : > { %v2055_v58 = vpop.eup %2054 }
 0x1c0   : > { %v2057_v25 = vpop.eup %2056  ;;  %v1493_v15 = vrot.slane %v2055_v58, %v2325_v26  ;;  %v1505_v19 = vrot.slane %v2055_v58, %v2331_v29  ;;  %v1517_v24 = vrot.slane %v2055_v58, %v2339_v33  ;;  %v1529_v4 = vrot.slane %v2055_v58, %v2359_v42 }
 0x1c1   : > { %v1497_v20 = vrot.slane %v2057_v25, %v2325_v26  ;;  %v1509_v21 = vrot.slane %v2057_v25, %v2331_v29  ;;  %v1521_v32 = vrot.slane %v2057_v25, %v2339_v33  ;;  %v1533_v43 = vrot.slane %v2057_v25, %v2359_v42 }
 0x1c2   : > { %v1498_v23 = vmul.f32 %v1493_v15, %v2422_v47  ;;  %v1510_v37 = vmul.f32 %v1505_v19, %v2431_v52  ;;  %v1522_v45 = vmul.f32 %v1517_v24, %v2426_v48  ;;  %v1541_v36 = vrot.slane %v2055_v58, %v2328_v27 }
 0x1c3   : > { %v1499_v31 = vmul.f32 %v1497_v20, %v2422_v47  ;;  %v1511_v41 = vmul.f32 %v1509_v21, %v2431_v52  ;;  %v1523_v49 = vmul.f32 %v1521_v32, %v2426_v48  ;;  %v1545_v50 = vrot.slane %v2057_v25, %v2328_v27 }
 0x1c4   : > { %v1500_v35 = vadd.f32 %v1498_v23, %v2424_v18  ;;  %v1534_v51 = vmul.f32 %v1529_v4, %v2434_v54  ;;  %v1553_v53 = vrot.slane %v2055_v58, %v2334_v30  ;;  %v1535_v56 = vmul.f32 %v1533_v43, %v2434_v54 }
 0x1c5   : > { %v1501_v40 = vadd.f32 %v1499_v31, %v2424_v18  ;;  %v1557_v57 = vrot.slane %v2057_v25, %v2334_v30  ;;  %v1546_v60 = vmul.f32 %v1541_v36, %v2454_v11  ;;  %v1565_v61 = vrot.slane %v2055_v58, %v2342_v34 }
 0x1c6   : > { %v1512_v44 = vadd.f32 %v1510_v37, %v1500_v35  ;;  %v1547_v59 = vmul.f32 %v1545_v50, %v2454_v11  ;;  %v1569_v0 = vrot.slane %v2057_v25, %v2342_v34  ;;  %v1558_v63 = vmul.f32 %v1553_v53, %v2448_v6 }
 0x1c7   : > { %v1513_v46 = vadd.f32 %v1511_v41, %v1501_v40  ;;  %v1577_v5 = vrot.slane %v2055_v58, %v2375_v7  ;;  %v1559_v3 = vmul.f32 %v1557_v57, %v2448_v6  ;;  %v1581_v10 = vrot.slane %v2057_v25, %v2375_v7 }
 0x1c8   : > { %v1524_v22 = vadd.f32 %v1522_v45, %v1512_v44  ;;  %v1570_v9 = vmul.f32 %v1565_v61, %v2466_v28  ;;  %v1571_v14 = vmul.f32 %v1569_v0, %v2466_v28 }
 0x1c9   : > { %v1525_v55 = vadd.f32 %v1523_v49, %v1513_v46  ;;  %v1582_v16 = vmul.f32 %v1577_v5, %v2471_v39  ;;  %v1583_v15 = vmul.f32 %v1581_v10, %v2471_v39  ;;  %v1693_v46 = vpop.permute.xlu1 %1692 }
 0x1ca   : > { %v1536_v38 = vadd.f32 %v1534_v51, %v1524_v22 }
 0x1cb   : > { %v1537_v62 = vadd.f32 %v1535_v56, %v1525_v55 }
 0x1cc   : > { %v1548_v2 = vadd.f32 %v1546_v60, %v1536_v38 }
 0x1cd   : > { %v1549_v8 = vadd.f32 %v1547_v59, %v1537_v62 }
 0x1ce   : > { %v1560_v12 = vadd.f32 %v1558_v63, %v1548_v2  ;;  %v1698_v63 = vpop.permute.xlu1 %1697 }
 0x1cf   : > { %v1561_v1 = vadd.f32 %v1559_v3, %v1549_v8 }
 0x1d0   : > { %v1572_v13 = vadd.f32 %v1570_v9, %v1560_v12 }
 0x1d1   : > { %v1573_v17 = vadd.f32 %v1571_v14, %v1561_v1 }
 0x1d2   : > { %v1584_v19 = vadd.f32 %v1582_v16, %v1572_v13  ;;  %v1720_v13 = vpop.permute.xlu1 %1719 }
 0x1d3   : > { %v1585_v20 = vadd.f32 %v1583_v15, %v1573_v17  ;;  %v1715_v17 = vpop.permute.xlu0 %1714 }
 0x1d4   : > { %2058 = vtanh.f32 %v1584_v19 }
 0x1d5   : > { %2060 = vtanh.f32 %v1585_v20 }
 0x1de   : > { %v2059_v58 = vpop.eup %2058 }
 0x1df   : > { %v2061_v21 = vpop.eup %2060  ;;  %v1591_v25 = vrot.slane %v2059_v58, %v2325_v26  ;;  %v1603_v23 = vrot.slane %v2059_v58, %v2331_v29  ;;  %v1615_v35 = vrot.slane %v2059_v58, %v2339_v33  ;;  %v1627_v43 = vrot.slane %v2059_v58, %v2359_v42 }
 0x1e0   : > { %v1595_v24 = vrot.slane %v2061_v21, %v2325_v26  ;;  %v1607_v31 = vrot.slane %v2061_v21, %v2331_v29  ;;  %v1619_v4 = vrot.slane %v2061_v21, %v2339_v33  ;;  %v1631_v36 = vrot.slane %v2061_v21, %v2359_v42 }
 0x1e1   : > { %v1596_v32 = vmul.f32 %v1591_v25, %v2422_v47  ;;  %v1608_v41 = vmul.f32 %v1603_v23, %v2431_v52  ;;  %v1620_v50 = vmul.f32 %v1615_v35, %v2426_v48  ;;  %v1643_v53 = vrot.slane %v2061_v21, %v2328_v27 }
 0x1e2   : > { %v1597_v37 = vmul.f32 %v1595_v24, %v2422_v47  ;;  %v1609_v45 = vmul.f32 %v1607_v31, %v2431_v52  ;;  %v1639_v47 = vrot.slane %v2059_v58, %v2328_v27  ;;  %v1621_v51 = vmul.f32 %v1619_v4, %v2426_v48  ;;  %v1732_v31 = vpop.permute.xlu0 %1731 }
 0x1e3   : > { %v1598_v40 = vadd.f32 %v1596_v32, %v2424_v18  ;;  %v1632_v56 = vmul.f32 %v1627_v43, %v2434_v54  ;;  %v1633_v52 = vmul.f32 %v1631_v36, %v2434_v54  ;;  %v1655_v42 = vrot.slane %v2061_v21, %v2334_v30 }
 0x1e4   : > { %v1599_v44 = vadd.f32 %v1597_v37, %v2424_v18  ;;  %v1651_v18 = vrot.slane %v2059_v58, %v2334_v30  ;;  %v1644_v60 = vmul.f32 %v1639_v47, %v2454_v11  ;;  %v1663_v61 = vrot.slane %v2059_v58, %v2342_v34 }
 0x1e5   : > { %v1610_v49 = vadd.f32 %v1608_v41, %v1598_v40  ;;  %v1645_v48 = vmul.f32 %v1643_v53, %v2454_v11  ;;  %v1667_v27 = vrot.slane %v2061_v21, %v2342_v34  ;;  %v1675_v2 = vrot.slane %v2059_v58, %v2375_v7 }
 0x1e6   : > { %v1611_v22 = vadd.f32 %v1609_v45, %v1599_v44  ;;  %v1656_v0 = vmul.f32 %v1651_v18, %v2448_v6  ;;  %v1657_v54 = vmul.f32 %v1655_v42, %v2448_v6  ;;  %v1679_v30 = vrot.slane %v2061_v21, %v2375_v7  ;;  %v1728_v6 = vpop.permute.xlu1 %1727 }
 0x1e7   : > { %v1622_v55 = vadd.f32 %v1620_v50, %v1610_v49  ;;  %v1668_v3 = vmul.f32 %v1663_v61, %v2466_v28  ;;  %v1669_v12 = vmul.f32 %v1667_v27, %v2466_v28  ;;  %v1680_v34 = vmul.f32 %v1675_v2, %v2471_v39 }
 0x1e8   : > { %v1623_v57 = vadd.f32 %v1621_v51, %v1611_v22  ;;  %v1681_v1 = vmul.f32 %v1679_v30, %v2471_v39 }
 0x1e9   : > { %v1634_v38 = vadd.f32 %v1632_v56, %v1622_v55 }
 0x1ea   : > { %v1635_v62 = vadd.f32 %v1633_v52, %v1623_v57  ;;  %v1752_v7 = vpop.permute.xlu1 %1751 }
 0x1eb   : > { %v1646_v59 = vadd.f32 %v1644_v60, %v1634_v38 }
 0x1ec   : > { %v1647_v5 = vadd.f32 %v1645_v48, %v1635_v62 }
 0x1ed   : > { %v1658_v8 = vadd.f32 %v1656_v0, %v1646_v59 }
 0x1ee   : > { %v1659_v10 = vadd.f32 %v1657_v54, %v1647_v5  ;;  %v1756_v37 = vpop.permute.xlu1 %1755 }
 0x1ef   : > { %v1670_v11 = vadd.f32 %v1668_v3, %v1658_v8 }
 0x1f0   : > { %v1671_v9 = vadd.f32 %v1669_v12, %v1659_v10 }
 0x1f1   : > { %v1682_v14 = vadd.f32 %v1680_v34, %v1670_v11 }
 0x1f2   : > { %v1683_v16 = vadd.f32 %v1681_v1, %v1671_v9 }
 0x1f3   : > { %2062 = vtanh.f32 %v1682_v14 }
 0x1f4   : > { %2064 = vtanh.f32 %v1683_v16 }
 0x1fd   : > { %v2063_v15 = vpop.eup %2062 }
 0x1fe   : > { %v2065_v19 = vpop.eup %2064  ;;  %v1703_v20 = vrot.slane %v2063_v15, %v2325_v26  ;;  %v1737_v28 = vrot.slane %v2063_v15, %v2331_v29  ;;  %v1761_v23 = vrot.slane %v2063_v15, %v2339_v33 }
 0x1ff   : > { %v1707_v58 = vrot.slane %v2065_v19, %v2325_v26  ;;  %v1741_v21 = vrot.slane %v2065_v19, %v2331_v29  ;;  %v1765_v24 = vrot.slane %v2065_v19, %v2339_v33 }
 0x200   : > { %v1708_v25 = vmul.f32 %v1703_v20, %v1693_v46  ;;  %v1710_v39 = vmul.f32 %v1703_v20, %v1698_v63  ;;  %v1742_v40 = vmul.f32 %v1737_v28, %v1728_v6  ;;  %v1744_v36 = vmul.f32 %v1737_v28, %v1732_v31 }
 0x201   : > { %v1709_v32 = vmul.f32 %v1707_v58, %v1693_v46  ;;  %v1711_v35 = vmul.f32 %v1707_v58, %v1698_v63  ;;  %v1743_v41 = vmul.f32 %v1741_v21, %v1728_v6  ;;  %v1745_v26 = vmul.f32 %v1741_v21, %v1732_v31 }
 0x202   : > { %v1724_v4 = vadd.f32 %v1720_v13, %v1710_v39  ;;  %v1722_v43 = vadd.f32 %v1715_v17, %v1708_v25  ;;  %v1766_v29 = vmul.f32 %v1761_v23, %v1752_v7  ;;  %v1767_v49 = vmul.f32 %v1765_v24, %v1752_v7 }
 0x203   : > { %v1725_v44 = vadd.f32 %v1720_v13, %v1711_v35  ;;  %v1723_v45 = vadd.f32 %v1715_v17, %v1709_v32  ;;  %v1768_v47 = vmul.f32 %v1761_v23, %v1756_v37  ;;  %v1769_v51 = vmul.f32 %v1765_v24, %v1756_v37 }
 0x204   : > { %v1746_v50 = vadd.f32 %v1742_v40, %v1722_v43  ;;  %v1748_v33 = vadd.f32 %v1744_v36, %v1724_v4 }
 0x205   : > { %v1747_v22 = vadd.f32 %v1743_v41, %v1723_v45  ;;  %v1749_v53 = vadd.f32 %v1745_v26, %v1725_v44 }
 0x206   : > { %v1770_v46 = vadd.f32 %v1766_v29, %v1746_v50  ;;  %v1772_v56 = vadd.f32 %v1768_v47, %v1748_v33 }
 0x207   : > { %v1771_v55 = vadd.f32 %v1767_v49, %v1747_v22  ;;  %v1773_v18 = vadd.f32 %v1769_v51, %v1749_v53 }
 0x208   : > { %2066 = vtanh.f32 %v1770_v46 }
 0x209   : > { %2068 = vtanh.f32 %v1771_v55 }
 0x20a   : > { %2070 = vtanh.f32 %v1772_v56 }
 0x20b   : > { %2072 = vtanh.f32 %v1773_v18 }
 0x212   : > { %v2067_v57 = vpop.eup %2066 }
 0x213   : > { %v2069_v52 = vpop.eup %2068  ;;  %v1778_v42 = vmul.f32 0.5, %v2067_v57 }
 0x214   : > { %v2071_v38 = vpop.eup %2070  ;;  %v1779_v60 = vmul.f32 0.5, %v2069_v52 }
 0x215   : > { %v2073_v61 = vpop.eup %2072  ;;  %v1782_v62 = vadd.f32 0.5, %v1778_v42  ;;  %v1780_v48 = vmul.f32 0.5, %v2071_v38 }
 0x216   : > { %v1783_v27 = vadd.f32 0.5, %v1779_v60  ;;  %v1781_v59 = vmul.f32 0.5, %v2073_v61 }
 0x217   : > { %1786 = vst [vmem:[%s350_s20] sm:$0xff] %v1782_v62  ;;  %v1784_v0 = vadd.f32 0.5, %v1780_v48 }
 0x218   : > { %1787 = vst [vmem:[%s350_s20 + $0x8] sm:$0xff] %v1783_v27  ;;  %v1785_v2 = vadd.f32 0.5, %v1781_v59 }
 0x219   : > { %1788 = vst [vmem:[%s350_s20 + $0x10] sm:$0xff] %v1784_v0 }
 0x21a   : > { %1789 = vst [vmem:[%s350_s20 + $0x18] sm:$0xff] %v1785_v2 }
 0x21b   : > { %2087 = shalt.err (!%p2084_p5)
}
 0x21c   : > { %s2088_s15 = scalar_lea.hbm %s2773_s26, 512  ;;  %s2092_s24 = scalar_lea.hbm %s2832_s9, 1024 }
 0x21d   : > { %p2089_p6 = scmp.ne.s32.totalorder %s2773_s26, %s2088_s15  ;;  %p2093_p10 = scmp.lt.u32.totalorder %s2773_s26, %s2832_s9 }
 0x21e   : > { %p2094_p11 = scmp.lt.u32.totalorder %s2092_s24, %s2088_s15  ;;  %p2096_p13 = scmp.lt.u32.totalorder %s2088_s15, %s2773_s26 }
 0x21f   : > { %p2090_p7 = pnand %p2089_p6, %p2263_p4 }
 0x220   : > { %p2095_p12 = por %p2094_p11, %p2093_p10 }
 0x221   : > { %p2091_p9 = pneg %p2090_p7 }
 0x222   : > { %p2097_p0 = por %p2096_p13, %p2095_p12 }
 0x224   : > { %p2098_p1 = pnand %p2097_p0, %p2091_p9 }
 0x226   : > { %2101 = shalt.err (!%p2098_p1)
}
 0x227   : > { %s2171_s27 = smov 256   ;;  %s2172_s29 = smov 16  }
 0x228   : > { %1900 = dma.vmem_to_hbm [thread:$0]  (%p2263_p4), %s2775_s23, 512, %s2773_s26, %s2777_s12, %s2171_s27, %s2171_s27, %s2172_s29  }
 0x229 PF: > { %p1906_p2 = scmp.ge.s32.totalorder %s2152_s14, 2  ;;  %s1821_s16 = sand.u32 1, %s2132_s30  }
 0x22a   : > { %s1822_s15 = scalar_lea.sflag [#allocation3], %s1821_s16 }
 0x22b   : > { %p1903_p3 = pnand %p1906_p2, %p2270_p8 }
 0x22d   : > { %2127 = dma.done.wait (!%p1903_p3), %s1822_s15, 512  }
 0x22e   : > { %2129 = vsyncadd (!%p1903_p3), %s1822_s15, 4294966784  ;;  %s22_s14 = sadd.s32 1, %s2152_s14   ;;  %s2835_s30 = smov %s2136_s10 }
 0x22f   : > { %p19_p5 = scmp.ge.s32.totalorder %s22_s14, 4   ;;  %s2836_s10 = smov %s2140_s11 }
 0x230   : > { %s2837_s11 = smov %s2276_s22  ;;  %s2838_s12 = smov %s2148_s13 }
 0x231   : > { %s2839_s13 = smov %s2841_s17  ;;  %21 = sbr.rel (!%p19_p5) target bundleno = 4 (0x4), region = 91 }
 0x238   :  { %1827 = vsyncpa [#allocation3], 1 }
 0x239   :  { %1829 = vsyncpa [#allocation3 + $0x1], 1 }

</bundles_post_ra>
